<compile_context>
chip_gen: v6e
topology: v6e:2x2x1
jax: 0.10.0
libtpu: 0.0.40
codegen_flags: <defaults>
</compile_context>

<pallas_src>
import functools

import jax
import jax.numpy as jnp
import numpy as np
from jax.experimental import pallas as pl
from jax.experimental.pallas import tpu as pltpu

STEP = 2  # dispersion step used by shift_3d / shift_back_3d


def _make_rnd_kernel(C, Wc, W_ext):
    """Fused backbone (1x1 conv + tanh) + RND update for one (batch, H-tile) block."""

    def rnd_kernel(w_ref, y_ref, phi_ref, phis_ref, mi_ref, mask_ref,
                   x_ref, masked_ref, s_ref):
        # Backbone input masking, whole block at once (VPU).
        masked_ref[...] = mi_ref[0] * mask_ref[0]

        # Pass 1: per output channel, backbone out_c = tanh(sum_cp w[c,cp]*masked[cp])
        # (scalar weights from SMEM, VPU accumulation), written straight into the
        # output block (it is the first term of the final answer).  Also accumulate
        # s = sum_c Phi_c * q_c; q_c is out_c placed at column offset STEP*c with
        # zeros elsewhere (no wraparound), so each channel only touches a window.
        s_ref[...] = jnp.zeros_like(s_ref)
        for c in range(C):
            acc = w_ref[c, 0] * masked_ref[0]
            for cp in range(1, C):
                acc = acc + w_ref[c, cp] * masked_ref[cp]
            out_c = jnp.tanh(acc)                       # (h_tile, Wc)
            x_ref[0, c] = out_c
            off = STEP * c
            s_ref[:, off:off + Wc] = (
                s_ref[:, off:off + Wc] + phi_ref[0, c, :, off:off + Wc] * out_c)

        # Pass 2: x_c = out_c + ((y - s) * inv_denom * Phi_c)[:, off:off+Wc]
        # shift_back_3d + crop never wraps, so it is a static window slice.
        inv_denom = pl.reciprocal(phis_ref[0] + 1e-7, approx=False)  # one EUP recip
        r = (y_ref[0] - s_ref[...]) * inv_denom         # (h_tile, W_ext), hoisted
        for c in range(C):
            off = STEP * c
            x_ref[0, c] = (x_ref[0, c]
                           + r[:, off:off + Wc] * phi_ref[0, c, :, off:off + Wc])

    return rnd_kernel


def rnd_forward(y, model_input, input_mask, Phi, Phi_s, w_mix, *, h_tile=None):
    B, C, H, W_ext = Phi.shape
    Bi, Ci, Hr, Wc = model_input.shape
    assert (Bi, Ci, Hr) == (B, C, H)
    # Square backbone output (torch zero-pad path) and no-wrap condition for the
    # slice-based shift / shift-back.
    assert Hr == Wc, "backbone output must be square (torch zero-pad path)"
    assert W_ext >= Wc + STEP * (C - 1), "dispersion width too small for no-wrap slices"

    if h_tile is None:
        h_tile = H
    assert H % h_tile == 0 and (h_tile % 8 == 0 or h_tile == H)
    grid = (B, H // h_tile)

    in_specs = [
        pl.BlockSpec(memory_space=pltpu.MemorySpace.SMEM),               # w_mix (C, C)
        pl.BlockSpec((1, h_tile, W_ext), lambda b, h: (b, h, 0)),        # y
        pl.BlockSpec((1, C, h_tile, W_ext), lambda b, h: (b, 0, h, 0)),  # Phi
        pl.BlockSpec((1, h_tile, W_ext), lambda b, h: (b, h, 0)),        # Phi_s
        pl.BlockSpec((1, C, h_tile, Wc), lambda b, h: (b, 0, h, 0)),     # model_input
        pl.BlockSpec((1, C, h_tile, Wc), lambda b, h: (b, 0, h, 0)),     # input_mask
    ]
    out_spec = pl.BlockSpec((1, C, h_tile, Wc), lambda b, h: (b, 0, h, 0))

    return pl.pallas_call(
        _make_rnd_kernel(C, Wc, W_ext),
        grid=grid,
        in_specs=in_specs,
        out_specs=out_spec,
        out_shape=jax.ShapeDtypeStruct((B, C, H, Wc), jnp.float32),  # cropped output
        scratch_shapes=[
            pltpu.VMEM((C, h_tile, Wc), jnp.float32),   # masked backbone input
            pltpu.VMEM((h_tile, W_ext), jnp.float32),   # s = sum_c Phi_c * q_c
        ],
        compiler_params=pltpu.CompilerParams(
            dimension_semantics=("parallel", "parallel"),
            vmem_limit_bytes=48 * 1024 * 1024,
        ),
    )(w_mix, y, Phi, Phi_s, model_input, input_mask)


# ---------------------------------------------------------------------------
# Pure-JAX reference (mirrors the torch forward) for a correctness check.
# ---------------------------------------------------------------------------
def rnd_forward_reference(y, model_input, input_mask, Phi, Phi_s, w_mix):
    B, C, H, W_ext = Phi.shape
    phi_mean = Phi / (Phi_s[:, None] + 1e-7)
    xr = y[:, None] * phi_mean
    out = jnp.tanh(
        jnp.einsum("oc,bchw->bohw", w_mix, model_input * input_mask,
                   precision=jax.lax.Precision.HIGHEST))
    if out.shape[-1] != W_ext and out.shape[-1] == out.shape[-2]:
        pad = jnp.zeros(out.shape[:3] + (W_ext - out.shape[-1],), out.dtype)
        out = jnp.concatenate([out, pad], axis=-1)
    q = jnp.stack([jnp.roll(out[:, c], STEP * c, axis=-1) for c in range(C)], axis=1)
    s = jnp.sum(Phi * q, axis=1)
    xn = q - s[:, None] * phi_mean
    t = xr + xn
    x = jnp.stack([jnp.roll(t[:, c], -STEP * c, axis=-1) for c in range(C)], axis=1)
    return x[:, :, :, :H]


if __name__ == "__main__":
    key = jax.random.PRNGKey(0)
    kphi, ky, kin, kmask, kw = jax.random.split(key, 5)

    B, C, H = 2, 8, 16
    W_ext = H + STEP * (C - 1)  # 30: dispersed CASSI measurement width

    Phi = jax.random.uniform(kphi, (B, C, H, W_ext), jnp.float32)
    Phi_s = jnp.sum(Phi, axis=1)                                    # (B, H, W_ext)
    y = jax.random.uniform(ky, (B, H, W_ext), jnp.float32)          # measurement
    model_input = jax.random.normal(kin, (B, C, H, H), jnp.float32)
    input_mask = jax.random.uniform(kmask, (B, C, H, H), jnp.float32)
    w_mix = jax.random.normal(kw, (C, C), jnp.float32) / jnp.sqrt(C)  # backbone weight

    fwd = jax.jit(functools.partial(rnd_forward, h_tile=8))  # grid = (B, H/8) = (2, 2)
    x = jax.block_until_ready(fwd(y, model_input, input_mask, Phi, Phi_s, w_mix))

    x_ref = rnd_forward_reference(y, model_input, input_mask, Phi, Phi_s, w_mix)
    np.testing.assert_allclose(np.asarray(x), np.asarray(x_ref), rtol=1e-3, atol=1e-3)
    assert x.shape == (B, C, H, H)
    print("KERNEL_OK")
</pallas_src>

<mosaic_0001>
module attributes {stable_mosaic.version = 11 : i64} {
  func.func @rnd_kernel(%arg0: i32, %arg1: i32, %arg2: memref<8x8xf32, #tpu.memory_space<smem>>, %arg3: memref<1x8x30xf32, #tpu.memory_space<vmem>>, %arg4: memref<1x8x8x30xf32, #tpu.memory_space<vmem>>, %arg5: memref<1x8x30xf32, #tpu.memory_space<vmem>>, %arg6: memref<1x8x8x16xf32, #tpu.memory_space<vmem>>, %arg7: memref<1x8x8x16xf32, #tpu.memory_space<vmem>>, %arg8: memref<1x8x8x16xf32, #tpu.memory_space<vmem>>, %arg9: memref<8x8x16xf32, #tpu.memory_space<vmem>>, %arg10: memref<8x30xf32, #tpu.memory_space<vmem>>) attributes {dimension_semantics = [#tpu.dimension_semantics<parallel>, #tpu.dimension_semantics<parallel>], iteration_bounds = array<i64: 2, 2>, scalar_prefetch = 0 : i64, scratch_operands = 2 : i64, tpu.core_type = #tpu.core_type<tc>, window_params = [{transform_indices = @transform_0, window_bounds = array<i64: 8, 8>}, {transform_indices = @transform_1, window_bounds = array<i64: 1, 8, 30>}, {transform_indices = @transform_2, window_bounds = array<i64: 1, 8, 8, 30>}, {transform_indices = @transform_3, window_bounds = array<i64: 1, 8, 30>}, {transform_indices = @transform_4, window_bounds = array<i64: 1, 8, 8, 16>}, {transform_indices = @transform_5, window_bounds = array<i64: 1, 8, 8, 16>}, {transform_indices = @transform_6, window_bounds = array<i64: 1, 8, 8, 16>}]} {
    %c0 = arith.constant 0 : index
    %c0_0 = arith.constant 0 : index
    %c0_1 = arith.constant 0 : index
    %c0_2 = arith.constant 0 : index
    %0 = vector.load %arg6[%c0, %c0_0, %c0_1, %c0_2] : memref<1x8x8x16xf32, #tpu.memory_space<vmem>>, vector<1x8x8x16xf32>
    %1 = vector.shape_cast %0 : vector<1x8x8x16xf32> to vector<8x8x16xf32>
    %c0_3 = arith.constant 0 : index
    %c0_4 = arith.constant 0 : index
    %c0_5 = arith.constant 0 : index
    %c0_6 = arith.constant 0 : index
    %2 = vector.load %arg7[%c0_3, %c0_4, %c0_5, %c0_6] : memref<1x8x8x16xf32, #tpu.memory_space<vmem>>, vector<1x8x8x16xf32>
    %3 = vector.shape_cast %2 : vector<1x8x8x16xf32> to vector<8x8x16xf32>
    %4 = arith.mulf %1, %3 : vector<8x8x16xf32>
    %c0_7 = arith.constant 0 : index
    %c0_8 = arith.constant 0 : index
    %c0_9 = arith.constant 0 : index
    %5 = vector.load %arg9[%c0_7, %c0_8, %c0_9] : memref<8x8x16xf32, #tpu.memory_space<vmem>>, vector<8x8x16xf32>
    tpu.vector_store %arg9[%c0_7, %c0_8, %c0_9], %4 {strides = array<i32>} : memref<8x8x16xf32, #tpu.memory_space<vmem>>, vector<8x8x16xf32>,
    %cst = arith.constant 0.000000e+00 : f32
    %6 = vector.broadcast %cst : f32 to vector<8x30xf32>
    %c0_10 = arith.constant 0 : index
    %c0_11 = arith.constant 0 : index
    %7 = vector.load %arg10[%c0_10, %c0_11] : memref<8x30xf32, #tpu.memory_space<vmem>>, vector<8x30xf32>
    tpu.vector_store %arg10[%c0_10, %c0_11], %6 {strides = array<i32>} : memref<8x30xf32, #tpu.memory_space<vmem>>, vector<8x30xf32>,
    %c0_12 = arith.constant 0 : index
    %c0_13 = arith.constant 0 : index
    %8 = memref.load %arg2[%c0_12, %c0_13] : memref<8x8xf32, #tpu.memory_space<smem>>
    %c0_14 = arith.constant 0 : index
    %c0_15 = arith.constant 0 : index
    %c0_16 = arith.constant 0 : index
    %9 = vector.load %arg9[%c0_14, %c0_15, %c0_16] : memref<8x8x16xf32, #tpu.memory_space<vmem>>, vector<1x8x16xf32>
    %10 = vector.shape_cast %9 : vector<1x8x16xf32> to vector<8x16xf32>
    %11 = vector.broadcast %8 : f32 to vector<8x16xf32>
    %12 = arith.mulf %11, %10 : vector<8x16xf32>
    %c0_17 = arith.constant 0 : index
    %c1 = arith.constant 1 : index
    %13 = memref.load %arg2[%c0_17, %c1] : memref<8x8xf32, #tpu.memory_space<smem>>
    %c1_18 = arith.constant 1 : index
    %c0_19 = arith.constant 0 : index
    %c0_20 = arith.constant 0 : index
    %14 = vector.load %arg9[%c1_18, %c0_19, %c0_20] : memref<8x8x16xf32, #tpu.memory_space<vmem>>, vector<1x8x16xf32>
    %15 = vector.shape_cast %14 : vector<1x8x16xf32> to vector<8x16xf32>
    %16 = vector.broadcast %13 : f32 to vector<8x16xf32>
    %17 = arith.mulf %16, %15 : vector<8x16xf32>
    %18 = arith.addf %12, %17 : vector<8x16xf32>
    %c0_21 = arith.constant 0 : index
    %c2 = arith.constant 2 : index
    %19 = memref.load %arg2[%c0_21, %c2] : memref<8x8xf32, #tpu.memory_space<smem>>
    %c2_22 = arith.constant 2 : index
    %c0_23 = arith.constant 0 : index
    %c0_24 = arith.constant 0 : index
    %20 = vector.load %arg9[%c2_22, %c0_23, %c0_24] : memref<8x8x16xf32, #tpu.memory_space<vmem>>, vector<1x8x16xf32>
    %21 = vector.shape_cast %20 : vector<1x8x16xf32> to vector<8x16xf32>
    %22 = vector.broadcast %19 : f32 to vector<8x16xf32>
    %23 = arith.mulf %22, %21 : vector<8x16xf32>
    %24 = arith.addf %18, %23 : vector<8x16xf32>
    %c0_25 = arith.constant 0 : index
    %c3 = arith.constant 3 : index
    %25 = memref.load %arg2[%c0_25, %c3] : memref<8x8xf32, #tpu.memory_space<smem>>
    %c3_26 = arith.constant 3 : index
    %c0_27 = arith.constant 0 : index
    %c0_28 = arith.constant 0 : index
    %26 = vector.load %arg9[%c3_26, %c0_27, %c0_28] : memref<8x8x16xf32, #tpu.memory_space<vmem>>, vector<1x8x16xf32>
    %27 = vector.shape_cast %26 : vector<1x8x16xf32> to vector<8x16xf32>
    %28 = vector.broadcast %25 : f32 to vector<8x16xf32>
    %29 = arith.mulf %28, %27 : vector<8x16xf32>
    %30 = arith.addf %24, %29 : vector<8x16xf32>
    %c0_29 = arith.constant 0 : index
    %c4 = arith.constant 4 : index
    %31 = memref.load %arg2[%c0_29, %c4] : memref<8x8xf32, #tpu.memory_space<smem>>
    %c4_30 = arith.constant 4 : index
    %c0_31 = arith.constant 0 : index
    %c0_32 = arith.constant 0 : index
    %32 = vector.load %arg9[%c4_30, %c0_31, %c0_32] : memref<8x8x16xf32, #tpu.memory_space<vmem>>, vector<1x8x16xf32>
    %33 = vector.shape_cast %32 : vector<1x8x16xf32> to vector<8x16xf32>
    %34 = vector.broadcast %31 : f32 to vector<8x16xf32>
    %35 = arith.mulf %34, %33 : vector<8x16xf32>
    %36 = arith.addf %30, %35 : vector<8x16xf32>
    %c0_33 = arith.constant 0 : index
    %c5 = arith.constant 5 : index
    %37 = memref.load %arg2[%c0_33, %c5] : memref<8x8xf32, #tpu.memory_space<smem>>
    %c5_34 = arith.constant 5 : index
    %c0_35 = arith.constant 0 : index
    %c0_36 = arith.constant 0 : index
    %38 = vector.load %arg9[%c5_34, %c0_35, %c0_36] : memref<8x8x16xf32, #tpu.memory_space<vmem>>, vector<1x8x16xf32>
    %39 = vector.shape_cast %38 : vector<1x8x16xf32> to vector<8x16xf32>
    %40 = vector.broadcast %37 : f32 to vector<8x16xf32>
    %41 = arith.mulf %40, %39 : vector<8x16xf32>
    %42 = arith.addf %36, %41 : vector<8x16xf32>
    %c0_37 = arith.constant 0 : index
    %c6 = arith.constant 6 : index
    %43 = memref.load %arg2[%c0_37, %c6] : memref<8x8xf32, #tpu.memory_space<smem>>
    %c6_38 = arith.constant 6 : index
    %c0_39 = arith.constant 0 : index
    %c0_40 = arith.constant 0 : index
    %44 = vector.load %arg9[%c6_38, %c0_39, %c0_40] : memref<8x8x16xf32, #tpu.memory_space<vmem>>, vector<1x8x16xf32>
    %45 = vector.shape_cast %44 : vector<1x8x16xf32> to vector<8x16xf32>
    %46 = vector.broadcast %43 : f32 to vector<8x16xf32>
    %47 = arith.mulf %46, %45 : vector<8x16xf32>
    %48 = arith.addf %42, %47 : vector<8x16xf32>
    %c0_41 = arith.constant 0 : index
    %c7 = arith.constant 7 : index
    %49 = memref.load %arg2[%c0_41, %c7] : memref<8x8xf32, #tpu.memory_space<smem>>
    %c7_42 = arith.constant 7 : index
    %c0_43 = arith.constant 0 : index
    %c0_44 = arith.constant 0 : index
    %50 = vector.load %arg9[%c7_42, %c0_43, %c0_44] : memref<8x8x16xf32, #tpu.memory_space<vmem>>, vector<1x8x16xf32>
    %51 = vector.shape_cast %50 : vector<1x8x16xf32> to vector<8x16xf32>
    %52 = vector.broadcast %49 : f32 to vector<8x16xf32>
    %53 = arith.mulf %52, %51 : vector<8x16xf32>
    %54 = arith.addf %48, %53 : vector<8x16xf32>
    %55 = math.tanh %54 : vector<8x16xf32>
    %c0_45 = arith.constant 0 : index
    %c0_46 = arith.constant 0 : index
    %c0_47 = arith.constant 0 : index
    %c0_48 = arith.constant 0 : index
    %56 = vector.load %arg8[%c0_45, %c0_46, %c0_47, %c0_48] : memref<1x8x8x16xf32, #tpu.memory_space<vmem>>, vector<1x1x8x16xf32>
    %57 = vector.shape_cast %56 : vector<1x1x8x16xf32> to vector<8x16xf32>
    %58 = vector.shape_cast %55 : vector<8x16xf32> to vector<1x1x8x16xf32>
    tpu.vector_store %arg8[%c0_45, %c0_46, %c0_47, %c0_48], %58 {strides = array<i32>} : memref<1x8x8x16xf32, #tpu.memory_space<vmem>>, vector<1x1x8x16xf32>,
    %c0_49 = arith.constant 0 : index
    %c0_50 = arith.constant 0 : index
    %59 = vector.load %arg10[%c0_49, %c0_50] : memref<8x30xf32, #tpu.memory_space<vmem>>, vector<8x16xf32>
    %c0_51 = arith.constant 0 : index
    %c0_52 = arith.constant 0 : index
    %c0_53 = arith.constant 0 : index
    %c0_54 = arith.constant 0 : index
    %60 = vector.load %arg4[%c0_51, %c0_52, %c0_53, %c0_54] : memref<1x8x8x30xf32, #tpu.memory_space<vmem>>, vector<1x1x8x16xf32>
    %61 = vector.shape_cast %60 : vector<1x1x8x16xf32> to vector<8x16xf32>
    %62 = arith.mulf %61, %55 : vector<8x16xf32>
    %63 = arith.addf %59, %62 : vector<8x16xf32>
    %c0_55 = arith.constant 0 : index
    %c0_56 = arith.constant 0 : index
    %64 = vector.load %arg10[%c0_55, %c0_56] : memref<8x30xf32, #tpu.memory_space<vmem>>, vector<8x16xf32>
    tpu.vector_store %arg10[%c0_55, %c0_56], %63 {strides = array<i32>} : memref<8x30xf32, #tpu.memory_space<vmem>>, vector<8x16xf32>,
    %c1_57 = arith.constant 1 : index
    %c0_58 = arith.constant 0 : index
    %65 = memref.load %arg2[%c1_57, %c0_58] : memref<8x8xf32, #tpu.memory_space<smem>>
    %c0_59 = arith.constant 0 : index
    %c0_60 = arith.constant 0 : index
    %c0_61 = arith.constant 0 : index
    %66 = vector.load %arg9[%c0_59, %c0_60, %c0_61] : memref<8x8x16xf32, #tpu.memory_space<vmem>>, vector<1x8x16xf32>
    %67 = vector.shape_cast %66 : vector<1x8x16xf32> to vector<8x16xf32>
    %68 = vector.broadcast %65 : f32 to vector<8x16xf32>
    %69 = arith.mulf %68, %67 : vector<8x16xf32>
    %c1_62 = arith.constant 1 : index
    %c1_63 = arith.constant 1 : index
    %70 = memref.load %arg2[%c1_62, %c1_63] : memref<8x8xf32, #tpu.memory_space<smem>>
    %c1_64 = arith.constant 1 : index
    %c0_65 = arith.constant 0 : index
    %c0_66 = arith.constant 0 : index
    %71 = vector.load %arg9[%c1_64, %c0_65, %c0_66] : memref<8x8x16xf32, #tpu.memory_space<vmem>>, vector<1x8x16xf32>
    %72 = vector.shape_cast %71 : vector<1x8x16xf32> to vector<8x16xf32>
    %73 = vector.broadcast %70 : f32 to vector<8x16xf32>
    %74 = arith.mulf %73, %72 : vector<8x16xf32>
    %75 = arith.addf %69, %74 : vector<8x16xf32>
    %c1_67 = arith.constant 1 : index
    %c2_68 = arith.constant 2 : index
    %76 = memref.load %arg2[%c1_67, %c2_68] : memref<8x8xf32, #tpu.memory_space<smem>>
    %c2_69 = arith.constant 2 : index
    %c0_70 = arith.constant 0 : index
    %c0_71 = arith.constant 0 : index
    %77 = vector.load %arg9[%c2_69, %c0_70, %c0_71] : memref<8x8x16xf32, #tpu.memory_space<vmem>>, vector<1x8x16xf32>
    %78 = vector.shape_cast %77 : vector<1x8x16xf32> to vector<8x16xf32>
    %79 = vector.broadcast %76 : f32 to vector<8x16xf32>
    %80 = arith.mulf %79, %78 : vector<8x16xf32>
    %81 = arith.addf %75, %80 : vector<8x16xf32>
    %c1_72 = arith.constant 1 : index
    %c3_73 = arith.constant 3 : index
    %82 = memref.load %arg2[%c1_72, %c3_73] : memref<8x8xf32, #tpu.memory_space<smem>>
    %c3_74 = arith.constant 3 : index
    %c0_75 = arith.constant 0 : index
    %c0_76 = arith.constant 0 : index
    %83 = vector.load %arg9[%c3_74, %c0_75, %c0_76] : memref<8x8x16xf32, #tpu.memory_space<vmem>>, vector<1x8x16xf32>
    %84 = vector.shape_cast %83 : vector<1x8x16xf32> to vector<8x16xf32>
    %85 = vector.broadcast %82 : f32 to vector<8x16xf32>
    %86 = arith.mulf %85, %84 : vector<8x16xf32>
    %87 = arith.addf %81, %86 : vector<8x16xf32>
    %c1_77 = arith.constant 1 : index
    %c4_78 = arith.constant 4 : index
    %88 = memref.load %arg2[%c1_77, %c4_78] : memref<8x8xf32, #tpu.memory_space<smem>>
    %c4_79 = arith.constant 4 : index
    %c0_80 = arith.constant 0 : index
    %c0_81 = arith.constant 0 : index
    %89 = vector.load %arg9[%c4_79, %c0_80, %c0_81] : memref<8x8x16xf32, #tpu.memory_space<vmem>>, vector<1x8x16xf32>
    %90 = vector.shape_cast %89 : vector<1x8x16xf32> to vector<8x16xf32>
    %91 = vector.broadcast %88 : f32 to vector<8x16xf32>
    %92 = arith.mulf %91, %90 : vector<8x16xf32>
    %93 = arith.addf %87, %92 : vector<8x16xf32>
    %c1_82 = arith.constant 1 : index
    %c5_83 = arith.constant 5 : index
    %94 = memref.load %arg2[%c1_82, %c5_83] : memref<8x8xf32, #tpu.memory_space<smem>>
    %c5_84 = arith.constant 5 : index
    %c0_85 = arith.constant 0 : index
    %c0_86 = arith.constant 0 : index
    %95 = vector.load %arg9[%c5_84, %c0_85, %c0_86] : memref<8x8x16xf32, #tpu.memory_space<vmem>>, vector<1x8x16xf32>
    %96 = vector.shape_cast %95 : vector<1x8x16xf32> to vector<8x16xf32>
    %97 = vector.broadcast %94 : f32 to vector<8x16xf32>
    %98 = arith.mulf %97, %96 : vector<8x16xf32>
    %99 = arith.addf %93, %98 : vector<8x16xf32>
    %c1_87 = arith.constant 1 : index
    %c6_88 = arith.constant 6 : index
    %100 = memref.load %arg2[%c1_87, %c6_88] : memref<8x8xf32, #tpu.memory_space<smem>>
    %c6_89 = arith.constant 6 : index
    %c0_90 = arith.constant 0 : index
    %c0_91 = arith.constant 0 : index
    %101 = vector.load %arg9[%c6_89, %c0_90, %c0_91] : memref<8x8x16xf32, #tpu.memory_space<vmem>>, vector<1x8x16xf32>
    %102 = vector.shape_cast %101 : vector<1x8x16xf32> to vector<8x16xf32>
    %103 = vector.broadcast %100 : f32 to vector<8x16xf32>
    %104 = arith.mulf %103, %102 : vector<8x16xf32>
    %105 = arith.addf %99, %104 : vector<8x16xf32>
    %c1_92 = arith.constant 1 : index
    %c7_93 = arith.constant 7 : index
    %106 = memref.load %arg2[%c1_92, %c7_93] : memref<8x8xf32, #tpu.memory_space<smem>>
    %c7_94 = arith.constant 7 : index
    %c0_95 = arith.constant 0 : index
    %c0_96 = arith.constant 0 : index
    %107 = vector.load %arg9[%c7_94, %c0_95, %c0_96] : memref<8x8x16xf32, #tpu.memory_space<vmem>>, vector<1x8x16xf32>
    %108 = vector.shape_cast %107 : vector<1x8x16xf32> to vector<8x16xf32>
    %109 = vector.broadcast %106 : f32 to vector<8x16xf32>
    %110 = arith.mulf %109, %108 : vector<8x16xf32>
    %111 = arith.addf %105, %110 : vector<8x16xf32>
    %112 = math.tanh %111 : vector<8x16xf32>
    %c0_97 = arith.constant 0 : index
    %c1_98 = arith.constant 1 : index
    %c0_99 = arith.constant 0 : index
    %c0_100 = arith.constant 0 : index
    %113 = vector.load %arg8[%c0_97, %c1_98, %c0_99, %c0_100] : memref<1x8x8x16xf32, #tpu.memory_space<vmem>>, vector<1x1x8x16xf32>
    %114 = vector.shape_cast %113 : vector<1x1x8x16xf32> to vector<8x16xf32>
    %115 = vector.shape_cast %112 : vector<8x16xf32> to vector<1x1x8x16xf32>
    tpu.vector_store %arg8[%c0_97, %c1_98, %c0_99, %c0_100], %115 {strides = array<i32>} : memref<1x8x8x16xf32, #tpu.memory_space<vmem>>, vector<1x1x8x16xf32>,
    %c0_101 = arith.constant 0 : index
    %c2_102 = arith.constant 2 : index
    %116 = vector.load %arg10[%c0_101, %c2_102] : memref<8x30xf32, #tpu.memory_space<vmem>>, vector<8x16xf32>
    %c0_103 = arith.constant 0 : index
    %c1_104 = arith.constant 1 : index
    %c0_105 = arith.constant 0 : index
    %c2_106 = arith.constant 2 : index
    %117 = vector.load %arg4[%c0_103, %c1_104, %c0_105, %c2_106] : memref<1x8x8x30xf32, #tpu.memory_space<vmem>>, vector<1x1x8x16xf32>
    %118 = vector.shape_cast %117 : vector<1x1x8x16xf32> to vector<8x16xf32>
    %119 = arith.mulf %118, %112 : vector<8x16xf32>
    %120 = arith.addf %116, %119 : vector<8x16xf32>
    %c0_107 = arith.constant 0 : index
    %c2_108 = arith.constant 2 : index
    %121 = vector.load %arg10[%c0_107, %c2_108] : memref<8x30xf32, #tpu.memory_space<vmem>>, vector<8x16xf32>
    tpu.vector_store %arg10[%c0_107, %c2_108], %120 {strides = array<i32>} : memref<8x30xf32, #tpu.memory_space<vmem>>, vector<8x16xf32>,
    %c2_109 = arith.constant 2 : index
    %c0_110 = arith.constant 0 : index
    %122 = memref.load %arg2[%c2_109, %c0_110] : memref<8x8xf32, #tpu.memory_space<smem>>
    %c0_111 = arith.constant 0 : index
    %c0_112 = arith.constant 0 : index
    %c0_113 = arith.constant 0 : index
    %123 = vector.load %arg9[%c0_111, %c0_112, %c0_113] : memref<8x8x16xf32, #tpu.memory_space<vmem>>, vector<1x8x16xf32>
    %124 = vector.shape_cast %123 : vector<1x8x16xf32> to vector<8x16xf32>
    %125 = vector.broadcast %122 : f32 to vector<8x16xf32>
    %126 = arith.mulf %125, %124 : vector<8x16xf32>
    %c2_114 = arith.constant 2 : index
    %c1_115 = arith.constant 1 : index
    %127 = memref.load %arg2[%c2_114, %c1_115] : memref<8x8xf32, #tpu.memory_space<smem>>
    %c1_116 = arith.constant 1 : index
    %c0_117 = arith.constant 0 : index
    %c0_118 = arith.constant 0 : index
    %128 = vector.load %arg9[%c1_116, %c0_117, %c0_118] : memref<8x8x16xf32, #tpu.memory_space<vmem>>, vector<1x8x16xf32>
    %129 = vector.shape_cast %128 : vector<1x8x16xf32> to vector<8x16xf32>
    %130 = vector.broadcast %127 : f32 to vector<8x16xf32>
    %131 = arith.mulf %130, %129 : vector<8x16xf32>
    %132 = arith.addf %126, %131 : vector<8x16xf32>
    %c2_119 = arith.constant 2 : index
    %c2_120 = arith.constant 2 : index
    %133 = memref.load %arg2[%c2_119, %c2_120] : memref<8x8xf32, #tpu.memory_space<smem>>
    %c2_121 = arith.constant 2 : index
    %c0_122 = arith.constant 0 : index
    %c0_123 = arith.constant 0 : index
    %134 = vector.load %arg9[%c2_121, %c0_122, %c0_123] : memref<8x8x16xf32, #tpu.memory_space<vmem>>, vector<1x8x16xf32>
    %135 = vector.shape_cast %134 : vector<1x8x16xf32> to vector<8x16xf32>
    %136 = vector.broadcast %133 : f32 to vector<8x16xf32>
    %137 = arith.mulf %136, %135 : vector<8x16xf32>
    %138 = arith.addf %132, %137 : vector<8x16xf32>
    %c2_124 = arith.constant 2 : index
    %c3_125 = arith.constant 3 : index
    %139 = memref.load %arg2[%c2_124, %c3_125] : memref<8x8xf32, #tpu.memory_space<smem>>
    %c3_126 = arith.constant 3 : index
    %c0_127 = arith.constant 0 : index
    %c0_128 = arith.constant 0 : index
    %140 = vector.load %arg9[%c3_126, %c0_127, %c0_128] : memref<8x8x16xf32, #tpu.memory_space<vmem>>, vector<1x8x16xf32>
    %141 = vector.shape_cast %140 : vector<1x8x16xf32> to vector<8x16xf32>
    %142 = vector.broadcast %139 : f32 to vector<8x16xf32>
    %143 = arith.mulf %142, %141 : vector<8x16xf32>
    %144 = arith.addf %138, %143 : vector<8x16xf32>
    %c2_129 = arith.constant 2 : index
    %c4_130 = arith.constant 4 : index
    %145 = memref.load %arg2[%c2_129, %c4_130] : memref<8x8xf32, #tpu.memory_space<smem>>
    %c4_131 = arith.constant 4 : index
    %c0_132 = arith.constant 0 : index
    %c0_133 = arith.constant 0 : index
    %146 = vector.load %arg9[%c4_131, %c0_132, %c0_133] : memref<8x8x16xf32, #tpu.memory_space<vmem>>, vector<1x8x16xf32>
    %147 = vector.shape_cast %146 : vector<1x8x16xf32> to vector<8x16xf32>
    %148 = vector.broadcast %145 : f32 to vector<8x16xf32>
    %149 = arith.mulf %148, %147 : vector<8x16xf32>
    %150 = arith.addf %144, %149 : vector<8x16xf32>
    %c2_134 = arith.constant 2 : index
    %c5_135 = arith.constant 5 : index
    %151 = memref.load %arg2[%c2_134, %c5_135] : memref<8x8xf32, #tpu.memory_space<smem>>
    %c5_136 = arith.constant 5 : index
    %c0_137 = arith.constant 0 : index
    %c0_138 = arith.constant 0 : index
    %152 = vector.load %arg9[%c5_136, %c0_137, %c0_138] : memref<8x8x16xf32, #tpu.memory_space<vmem>>, vector<1x8x16xf32>
    %153 = vector.shape_cast %152 : vector<1x8x16xf32> to vector<8x16xf32>
    %154 = vector.broadcast %151 : f32 to vector<8x16xf32>
    %155 = arith.mulf %154, %153 : vector<8x16xf32>
    %156 = arith.addf %150, %155 : vector<8x16xf32>
    %c2_139 = arith.constant 2 : index
    %c6_140 = arith.constant 6 : index
    %157 = memref.load %arg2[%c2_139, %c6_140] : memref<8x8xf32, #tpu.memory_space<smem>>
    %c6_141 = arith.constant 6 : index
    %c0_142 = arith.constant 0 : index
    %c0_143 = arith.constant 0 : index
    %158 = vector.load %arg9[%c6_141, %c0_142, %c0_143] : memref<8x8x16xf32, #tpu.memory_space<vmem>>, vector<1x8x16xf32>
    %159 = vector.shape_cast %158 : vector<1x8x16xf32> to vector<8x16xf32>
    %160 = vector.broadcast %157 : f32 to vector<8x16xf32>
    %161 = arith.mulf %160, %159 : vector<8x16xf32>
    %162 = arith.addf %156, %161 : vector<8x16xf32>
    %c2_144 = arith.constant 2 : index
    %c7_145 = arith.constant 7 : index
    %163 = memref.load %arg2[%c2_144, %c7_145] : memref<8x8xf32, #tpu.memory_space<smem>>
    %c7_146 = arith.constant 7 : index
    %c0_147 = arith.constant 0 : index
    %c0_148 = arith.constant 0 : index
    %164 = vector.load %arg9[%c7_146, %c0_147, %c0_148] : memref<8x8x16xf32, #tpu.memory_space<vmem>>, vector<1x8x16xf32>
    %165 = vector.shape_cast %164 : vector<1x8x16xf32> to vector<8x16xf32>
    %166 = vector.broadcast %163 : f32 to vector<8x16xf32>
    %167 = arith.mulf %166, %165 : vector<8x16xf32>
    %168 = arith.addf %162, %167 : vector<8x16xf32>
    %169 = math.tanh %168 : vector<8x16xf32>
    %c0_149 = arith.constant 0 : index
    %c2_150 = arith.constant 2 : index
    %c0_151 = arith.constant 0 : index
    %c0_152 = arith.constant 0 : index
    %170 = vector.load %arg8[%c0_149, %c2_150, %c0_151, %c0_152] : memref<1x8x8x16xf32, #tpu.memory_space<vmem>>, vector<1x1x8x16xf32>
    %171 = vector.shape_cast %170 : vector<1x1x8x16xf32> to vector<8x16xf32>
    %172 = vector.shape_cast %169 : vector<8x16xf32> to vector<1x1x8x16xf32>
    tpu.vector_store %arg8[%c0_149, %c2_150, %c0_151, %c0_152], %172 {strides = array<i32>} : memref<1x8x8x16xf32, #tpu.memory_space<vmem>>, vector<1x1x8x16xf32>,
    %c0_153 = arith.constant 0 : index
    %c4_154 = arith.constant 4 : index
    %173 = vector.load %arg10[%c0_153, %c4_154] : memref<8x30xf32, #tpu.memory_space<vmem>>, vector<8x16xf32>
    %c0_155 = arith.constant 0 : index
    %c2_156 = arith.constant 2 : index
    %c0_157 = arith.constant 0 : index
    %c4_158 = arith.constant 4 : index
    %174 = vector.load %arg4[%c0_155, %c2_156, %c0_157, %c4_158] : memref<1x8x8x30xf32, #tpu.memory_space<vmem>>, vector<1x1x8x16xf32>
    %175 = vector.shape_cast %174 : vector<1x1x8x16xf32> to vector<8x16xf32>
    %176 = arith.mulf %175, %169 : vector<8x16xf32>
    %177 = arith.addf %173, %176 : vector<8x16xf32>
    %c0_159 = arith.constant 0 : index
    %c4_160 = arith.constant 4 : index
    %178 = vector.load %arg10[%c0_159, %c4_160] : memref<8x30xf32, #tpu.memory_space<vmem>>, vector<8x16xf32>
    tpu.vector_store %arg10[%c0_159, %c4_160], %177 {strides = array<i32>} : memref<8x30xf32, #tpu.memory_space<vmem>>, vector<8x16xf32>,
    %c3_161 = arith.constant 3 : index
    %c0_162 = arith.constant 0 : index
    %179 = memref.load %arg2[%c3_161, %c0_162] : memref<8x8xf32, #tpu.memory_space<smem>>
    %c0_163 = arith.constant 0 : index
    %c0_164 = arith.constant 0 : index
    %c0_165 = arith.constant 0 : index
    %180 = vector.load %arg9[%c0_163, %c0_164, %c0_165] : memref<8x8x16xf32, #tpu.memory_space<vmem>>, vector<1x8x16xf32>
    %181 = vector.shape_cast %180 : vector<1x8x16xf32> to vector<8x16xf32>
    %182 = vector.broadcast %179 : f32 to vector<8x16xf32>
    %183 = arith.mulf %182, %181 : vector<8x16xf32>
    %c3_166 = arith.constant 3 : index
    %c1_167 = arith.constant 1 : index
    %184 = memref.load %arg2[%c3_166, %c1_167] : memref<8x8xf32, #tpu.memory_space<smem>>
    %c1_168 = arith.constant 1 : index
    %c0_169 = arith.constant 0 : index
    %c0_170 = arith.constant 0 : index
    %185 = vector.load %arg9[%c1_168, %c0_169, %c0_170] : memref<8x8x16xf32, #tpu.memory_space<vmem>>, vector<1x8x16xf32>
    %186 = vector.shape_cast %185 : vector<1x8x16xf32> to vector<8x16xf32>
    %187 = vector.broadcast %184 : f32 to vector<8x16xf32>
    %188 = arith.mulf %187, %186 : vector<8x16xf32>
    %189 = arith.addf %183, %188 : vector<8x16xf32>
    %c3_171 = arith.constant 3 : index
    %c2_172 = arith.constant 2 : index
    %190 = memref.load %arg2[%c3_171, %c2_172] : memref<8x8xf32, #tpu.memory_space<smem>>
    %c2_173 = arith.constant 2 : index
    %c0_174 = arith.constant 0 : index
    %c0_175 = arith.constant 0 : index
    %191 = vector.load %arg9[%c2_173, %c0_174, %c0_175] : memref<8x8x16xf32, #tpu.memory_space<vmem>>, vector<1x8x16xf32>
    %192 = vector.shape_cast %191 : vector<1x8x16xf32> to vector<8x16xf32>
    %193 = vector.broadcast %190 : f32 to vector<8x16xf32>
    %194 = arith.mulf %193, %192 : vector<8x16xf32>
    %195 = arith.addf %189, %194 : vector<8x16xf32>
    %c3_176 = arith.constant 3 : index
    %c3_177 = arith.constant 3 : index
    %196 = memref.load %arg2[%c3_176, %c3_177] : memref<8x8xf32, #tpu.memory_space<smem>>
    %c3_178 = arith.constant 3 : index
    %c0_179 = arith.constant 0 : index
    %c0_180 = arith.constant 0 : index
    %197 = vector.load %arg9[%c3_178, %c0_179, %c0_180] : memref<8x8x16xf32, #tpu.memory_space<vmem>>, vector<1x8x16xf32>
    %198 = vector.shape_cast %197 : vector<1x8x16xf32> to vector<8x16xf32>
    %199 = vector.broadcast %196 : f32 to vector<8x16xf32>
    %200 = arith.mulf %199, %198 : vector<8x16xf32>
    %201 = arith.addf %195, %200 : vector<8x16xf32>
    %c3_181 = arith.constant 3 : index
    %c4_182 = arith.constant 4 : index
    %202 = memref.load %arg2[%c3_181, %c4_182] : memref<8x8xf32, #tpu.memory_space<smem>>
    %c4_183 = arith.constant 4 : index
    %c0_184 = arith.constant 0 : index
    %c0_185 = arith.constant 0 : index
    %203 = vector.load %arg9[%c4_183, %c0_184, %c0_185] : memref<8x8x16xf32, #tpu.memory_space<vmem>>, vector<1x8x16xf32>
    %204 = vector.shape_cast %203 : vector<1x8x16xf32> to vector<8x16xf32>
    %205 = vector.broadcast %202 : f32 to vector<8x16xf32>
    %206 = arith.mulf %205, %204 : vector<8x16xf32>
    %207 = arith.addf %201, %206 : vector<8x16xf32>
    %c3_186 = arith.constant 3 : index
    %c5_187 = arith.constant 5 : index
    %208 = memref.load %arg2[%c3_186, %c5_187] : memref<8x8xf32, #tpu.memory_space<smem>>
    %c5_188 = arith.constant 5 : index
    %c0_189 = arith.constant 0 : index
    %c0_190 = arith.constant 0 : index
    %209 = vector.load %arg9[%c5_188, %c0_189, %c0_190] : memref<8x8x16xf32, #tpu.memory_space<vmem>>, vector<1x8x16xf32>
    %210 = vector.shape_cast %209 : vector<1x8x16xf32> to vector<8x16xf32>
    %211 = vector.broadcast %208 : f32 to vector<8x16xf32>
    %212 = arith.mulf %211, %210 : vector<8x16xf32>
    %213 = arith.addf %207, %212 : vector<8x16xf32>
    %c3_191 = arith.constant 3 : index
    %c6_192 = arith.constant 6 : index
    %214 = memref.load %arg2[%c3_191, %c6_192] : memref<8x8xf32, #tpu.memory_space<smem>>
    %c6_193 = arith.constant 6 : index
    %c0_194 = arith.constant 0 : index
    %c0_195 = arith.constant 0 : index
    %215 = vector.load %arg9[%c6_193, %c0_194, %c0_195] : memref<8x8x16xf32, #tpu.memory_space<vmem>>, vector<1x8x16xf32>
    %216 = vector.shape_cast %215 : vector<1x8x16xf32> to vector<8x16xf32>
    %217 = vector.broadcast %214 : f32 to vector<8x16xf32>
    %218 = arith.mulf %217, %216 : vector<8x16xf32>
    %219 = arith.addf %213, %218 : vector<8x16xf32>
    %c3_196 = arith.constant 3 : index
    %c7_197 = arith.constant 7 : index
    %220 = memref.load %arg2[%c3_196, %c7_197] : memref<8x8xf32, #tpu.memory_space<smem>>
    %c7_198 = arith.constant 7 : index
    %c0_199 = arith.constant 0 : index
    %c0_200 = arith.constant 0 : index
    %221 = vector.load %arg9[%c7_198, %c0_199, %c0_200] : memref<8x8x16xf32, #tpu.memory_space<vmem>>, vector<1x8x16xf32>
    %222 = vector.shape_cast %221 : vector<1x8x16xf32> to vector<8x16xf32>
    %223 = vector.broadcast %220 : f32 to vector<8x16xf32>
    %224 = arith.mulf %223, %222 : vector<8x16xf32>
    %225 = arith.addf %219, %224 : vector<8x16xf32>
    %226 = math.tanh %225 : vector<8x16xf32>
    %c0_201 = arith.constant 0 : index
    %c3_202 = arith.constant 3 : index
    %c0_203 = arith.constant 0 : index
    %c0_204 = arith.constant 0 : index
    %227 = vector.load %arg8[%c0_201, %c3_202, %c0_203, %c0_204] : memref<1x8x8x16xf32, #tpu.memory_space<vmem>>, vector<1x1x8x16xf32>
    %228 = vector.shape_cast %227 : vector<1x1x8x16xf32> to vector<8x16xf32>
    %229 = vector.shape_cast %226 : vector<8x16xf32> to vector<1x1x8x16xf32>
    tpu.vector_store %arg8[%c0_201, %c3_202, %c0_203, %c0_204], %229 {strides = array<i32>} : memref<1x8x8x16xf32, #tpu.memory_space<vmem>>, vector<1x1x8x16xf32>,
    %c0_205 = arith.constant 0 : index
    %c6_206 = arith.constant 6 : index
    %230 = vector.load %arg10[%c0_205, %c6_206] : memref<8x30xf32, #tpu.memory_space<vmem>>, vector<8x16xf32>
    %c0_207 = arith.constant 0 : index
    %c3_208 = arith.constant 3 : index
    %c0_209 = arith.constant 0 : index
    %c6_210 = arith.constant 6 : index
    %231 = vector.load %arg4[%c0_207, %c3_208, %c0_209, %c6_210] : memref<1x8x8x30xf32, #tpu.memory_space<vmem>>, vector<1x1x8x16xf32>
    %232 = vector.shape_cast %231 : vector<1x1x8x16xf32> to vector<8x16xf32>
    %233 = arith.mulf %232, %226 : vector<8x16xf32>
    %234 = arith.addf %230, %233 : vector<8x16xf32>
    %c0_211 = arith.constant 0 : index
    %c6_212 = arith.constant 6 : index
    %235 = vector.load %arg10[%c0_211, %c6_212] : memref<8x30xf32, #tpu.memory_space<vmem>>, vector<8x16xf32>
    tpu.vector_store %arg10[%c0_211, %c6_212], %234 {strides = array<i32>} : memref<8x30xf32, #tpu.memory_space<vmem>>, vector<8x16xf32>,
    %c4_213 = arith.constant 4 : index
    %c0_214 = arith.constant 0 : index
    %236 = memref.load %arg2[%c4_213, %c0_214] : memref<8x8xf32, #tpu.memory_space<smem>>
    %c0_215 = arith.constant 0 : index
    %c0_216 = arith.constant 0 : index
    %c0_217 = arith.constant 0 : index
    %237 = vector.load %arg9[%c0_215, %c0_216, %c0_217] : memref<8x8x16xf32, #tpu.memory_space<vmem>>, vector<1x8x16xf32>
    %238 = vector.shape_cast %237 : vector<1x8x16xf32> to vector<8x16xf32>
    %239 = vector.broadcast %236 : f32 to vector<8x16xf32>
    %240 = arith.mulf %239, %238 : vector<8x16xf32>
    %c4_218 = arith.constant 4 : index
    %c1_219 = arith.constant 1 : index
    %241 = memref.load %arg2[%c4_218, %c1_219] : memref<8x8xf32, #tpu.memory_space<smem>>
    %c1_220 = arith.constant 1 : index
    %c0_221 = arith.constant 0 : index
    %c0_222 = arith.constant 0 : index
    %242 = vector.load %arg9[%c1_220, %c0_221, %c0_222] : memref<8x8x16xf32, #tpu.memory_space<vmem>>, vector<1x8x16xf32>
    %243 = vector.shape_cast %242 : vector<1x8x16xf32> to vector<8x16xf32>
    %244 = vector.broadcast %241 : f32 to vector<8x16xf32>
    %245 = arith.mulf %244, %243 : vector<8x16xf32>
    %246 = arith.addf %240, %245 : vector<8x16xf32>
    %c4_223 = arith.constant 4 : index
    %c2_224 = arith.constant 2 : index
    %247 = memref.load %arg2[%c4_223, %c2_224] : memref<8x8xf32, #tpu.memory_space<smem>>
    %c2_225 = arith.constant 2 : index
    %c0_226 = arith.constant 0 : index
    %c0_227 = arith.constant 0 : index
    %248 = vector.load %arg9[%c2_225, %c0_226, %c0_227] : memref<8x8x16xf32, #tpu.memory_space<vmem>>, vector<1x8x16xf32>
    %249 = vector.shape_cast %248 : vector<1x8x16xf32> to vector<8x16xf32>
    %250 = vector.broadcast %247 : f32 to vector<8x16xf32>
    %251 = arith.mulf %250, %249 : vector<8x16xf32>
    %252 = arith.addf %246, %251 : vector<8x16xf32>
    %c4_228 = arith.constant 4 : index
    %c3_229 = arith.constant 3 : index
    %253 = memref.load %arg2[%c4_228, %c3_229] : memref<8x8xf32, #tpu.memory_space<smem>>
    %c3_230 = arith.constant 3 : index
    %c0_231 = arith.constant 0 : index
    %c0_232 = arith.constant 0 : index
    %254 = vector.load %arg9[%c3_230, %c0_231, %c0_232] : memref<8x8x16xf32, #tpu.memory_space<vmem>>, vector<1x8x16xf32>
    %255 = vector.shape_cast %254 : vector<1x8x16xf32> to vector<8x16xf32>
    %256 = vector.broadcast %253 : f32 to vector<8x16xf32>
    %257 = arith.mulf %256, %255 : vector<8x16xf32>
    %258 = arith.addf %252, %257 : vector<8x16xf32>
    %c4_233 = arith.constant 4 : index
    %c4_234 = arith.constant 4 : index
    %259 = memref.load %arg2[%c4_233, %c4_234] : memref<8x8xf32, #tpu.memory_space<smem>>
    %c4_235 = arith.constant 4 : index
    %c0_236 = arith.constant 0 : index
    %c0_237 = arith.constant 0 : index
    %260 = vector.load %arg9[%c4_235, %c0_236, %c0_237] : memref<8x8x16xf32, #tpu.memory_space<vmem>>, vector<1x8x16xf32>
    %261 = vector.shape_cast %260 : vector<1x8x16xf32> to vector<8x16xf32>
    %262 = vector.broadcast %259 : f32 to vector<8x16xf32>
    %263 = arith.mulf %262, %261 : vector<8x16xf32>
    %264 = arith.addf %258, %263 : vector<8x16xf32>
    %c4_238 = arith.constant 4 : index
    %c5_239 = arith.constant 5 : index
    %265 = memref.load %arg2[%c4_238, %c5_239] : memref<8x8xf32, #tpu.memory_space<smem>>
    %c5_240 = arith.constant 5 : index
    %c0_241 = arith.constant 0 : index
    %c0_242 = arith.constant 0 : index
    %266 = vector.load %arg9[%c5_240, %c0_241, %c0_242] : memref<8x8x16xf32, #tpu.memory_space<vmem>>, vector<1x8x16xf32>
    %267 = vector.shape_cast %266 : vector<1x8x16xf32> to vector<8x16xf32>
    %268 = vector.broadcast %265 : f32 to vector<8x16xf32>
    %269 = arith.mulf %268, %267 : vector<8x16xf32>
    %270 = arith.addf %264, %269 : vector<8x16xf32>
    %c4_243 = arith.constant 4 : index
    %c6_244 = arith.constant 6 : index
    %271 = memref.load %arg2[%c4_243, %c6_244] : memref<8x8xf32, #tpu.memory_space<smem>>
    %c6_245 = arith.constant 6 : index
    %c0_246 = arith.constant 0 : index
    %c0_247 = arith.constant 0 : index
    %272 = vector.load %arg9[%c6_245, %c0_246, %c0_247] : memref<8x8x16xf32, #tpu.memory_space<vmem>>, vector<1x8x16xf32>
    %273 = vector.shape_cast %272 : vector<1x8x16xf32> to vector<8x16xf32>
    %274 = vector.broadcast %271 : f32 to vector<8x16xf32>
    %275 = arith.mulf %274, %273 : vector<8x16xf32>
    %276 = arith.addf %270, %275 : vector<8x16xf32>
    %c4_248 = arith.constant 4 : index
    %c7_249 = arith.constant 7 : index
    %277 = memref.load %arg2[%c4_248, %c7_249] : memref<8x8xf32, #tpu.memory_space<smem>>
    %c7_250 = arith.constant 7 : index
    %c0_251 = arith.constant 0 : index
    %c0_252 = arith.constant 0 : index
    %278 = vector.load %arg9[%c7_250, %c0_251, %c0_252] : memref<8x8x16xf32, #tpu.memory_space<vmem>>, vector<1x8x16xf32>
    %279 = vector.shape_cast %278 : vector<1x8x16xf32> to vector<8x16xf32>
    %280 = vector.broadcast %277 : f32 to vector<8x16xf32>
    %281 = arith.mulf %280, %279 : vector<8x16xf32>
    %282 = arith.addf %276, %281 : vector<8x16xf32>
    %283 = math.tanh %282 : vector<8x16xf32>
    %c0_253 = arith.constant 0 : index
    %c4_254 = arith.constant 4 : index
    %c0_255 = arith.constant 0 : index
    %c0_256 = arith.constant 0 : index
    %284 = vector.load %arg8[%c0_253, %c4_254, %c0_255, %c0_256] : memref<1x8x8x16xf32, #tpu.memory_space<vmem>>, vector<1x1x8x16xf32>
    %285 = vector.shape_cast %284 : vector<1x1x8x16xf32> to vector<8x16xf32>
    %286 = vector.shape_cast %283 : vector<8x16xf32> to vector<1x1x8x16xf32>
    tpu.vector_store %arg8[%c0_253, %c4_254, %c0_255, %c0_256], %286 {strides = array<i32>} : memref<1x8x8x16xf32, #tpu.memory_space<vmem>>, vector<1x1x8x16xf32>,
    %c0_257 = arith.constant 0 : index
    %c8 = arith.constant 8 : index
    %287 = vector.load %arg10[%c0_257, %c8] : memref<8x30xf32, #tpu.memory_space<vmem>>, vector<8x16xf32>
    %c0_258 = arith.constant 0 : index
    %c4_259 = arith.constant 4 : index
    %c0_260 = arith.constant 0 : index
    %c8_261 = arith.constant 8 : index
    %288 = vector.load %arg4[%c0_258, %c4_259, %c0_260, %c8_261] : memref<1x8x8x30xf32, #tpu.memory_space<vmem>>, vector<1x1x8x16xf32>
    %289 = vector.shape_cast %288 : vector<1x1x8x16xf32> to vector<8x16xf32>
    %290 = arith.mulf %289, %283 : vector<8x16xf32>
    %291 = arith.addf %287, %290 : vector<8x16xf32>
    %c0_262 = arith.constant 0 : index
    %c8_263 = arith.constant 8 : index
    %292 = vector.load %arg10[%c0_262, %c8_263] : memref<8x30xf32, #tpu.memory_space<vmem>>, vector<8x16xf32>
    tpu.vector_store %arg10[%c0_262, %c8_263], %291 {strides = array<i32>} : memref<8x30xf32, #tpu.memory_space<vmem>>, vector<8x16xf32>,
    %c5_264 = arith.constant 5 : index
    %c0_265 = arith.constant 0 : index
    %293 = memref.load %arg2[%c5_264, %c0_265] : memref<8x8xf32, #tpu.memory_space<smem>>
    %c0_266 = arith.constant 0 : index
    %c0_267 = arith.constant 0 : index
    %c0_268 = arith.constant 0 : index
    %294 = vector.load %arg9[%c0_266, %c0_267, %c0_268] : memref<8x8x16xf32, #tpu.memory_space<vmem>>, vector<1x8x16xf32>
    %295 = vector.shape_cast %294 : vector<1x8x16xf32> to vector<8x16xf32>
    %296 = vector.broadcast %293 : f32 to vector<8x16xf32>
    %297 = arith.mulf %296, %295 : vector<8x16xf32>
    %c5_269 = arith.constant 5 : index
    %c1_270 = arith.constant 1 : index
    %298 = memref.load %arg2[%c5_269, %c1_270] : memref<8x8xf32, #tpu.memory_space<smem>>
    %c1_271 = arith.constant 1 : index
    %c0_272 = arith.constant 0 : index
    %c0_273 = arith.constant 0 : index
    %299 = vector.load %arg9[%c1_271, %c0_272, %c0_273] : memref<8x8x16xf32, #tpu.memory_space<vmem>>, vector<1x8x16xf32>
    %300 = vector.shape_cast %299 : vector<1x8x16xf32> to vector<8x16xf32>
    %301 = vector.broadcast %298 : f32 to vector<8x16xf32>
    %302 = arith.mulf %301, %300 : vector<8x16xf32>
    %303 = arith.addf %297, %302 : vector<8x16xf32>
    %c5_274 = arith.constant 5 : index
    %c2_275 = arith.constant 2 : index
    %304 = memref.load %arg2[%c5_274, %c2_275] : memref<8x8xf32, #tpu.memory_space<smem>>
    %c2_276 = arith.constant 2 : index
    %c0_277 = arith.constant 0 : index
    %c0_278 = arith.constant 0 : index
    %305 = vector.load %arg9[%c2_276, %c0_277, %c0_278] : memref<8x8x16xf32, #tpu.memory_space<vmem>>, vector<1x8x16xf32>
    %306 = vector.shape_cast %305 : vector<1x8x16xf32> to vector<8x16xf32>
    %307 = vector.broadcast %304 : f32 to vector<8x16xf32>
    %308 = arith.mulf %307, %306 : vector<8x16xf32>
    %309 = arith.addf %303, %308 : vector<8x16xf32>
    %c5_279 = arith.constant 5 : index
    %c3_280 = arith.constant 3 : index
    %310 = memref.load %arg2[%c5_279, %c3_280] : memref<8x8xf32, #tpu.memory_space<smem>>
    %c3_281 = arith.constant 3 : index
    %c0_282 = arith.constant 0 : index
    %c0_283 = arith.constant 0 : index
    %311 = vector.load %arg9[%c3_281, %c0_282, %c0_283] : memref<8x8x16xf32, #tpu.memory_space<vmem>>, vector<1x8x16xf32>
    %312 = vector.shape_cast %311 : vector<1x8x16xf32> to vector<8x16xf32>
    %313 = vector.broadcast %310 : f32 to vector<8x16xf32>
    %314 = arith.mulf %313, %312 : vector<8x16xf32>
    %315 = arith.addf %309, %314 : vector<8x16xf32>
    %c5_284 = arith.constant 5 : index
    %c4_285 = arith.constant 4 : index
    %316 = memref.load %arg2[%c5_284, %c4_285] : memref<8x8xf32, #tpu.memory_space<smem>>
    %c4_286 = arith.constant 4 : index
    %c0_287 = arith.constant 0 : index
    %c0_288 = arith.constant 0 : index
    %317 = vector.load %arg9[%c4_286, %c0_287, %c0_288] : memref<8x8x16xf32, #tpu.memory_space<vmem>>, vector<1x8x16xf32>
    %318 = vector.shape_cast %317 : vector<1x8x16xf32> to vector<8x16xf32>
    %319 = vector.broadcast %316 : f32 to vector<8x16xf32>
    %320 = arith.mulf %319, %318 : vector<8x16xf32>
    %321 = arith.addf %315, %320 : vector<8x16xf32>
    %c5_289 = arith.constant 5 : index
    %c5_290 = arith.constant 5 : index
    %322 = memref.load %arg2[%c5_289, %c5_290] : memref<8x8xf32, #tpu.memory_space<smem>>
    %c5_291 = arith.constant 5 : index
    %c0_292 = arith.constant 0 : index
    %c0_293 = arith.constant 0 : index
    %323 = vector.load %arg9[%c5_291, %c0_292, %c0_293] : memref<8x8x16xf32, #tpu.memory_space<vmem>>, vector<1x8x16xf32>
    %324 = vector.shape_cast %323 : vector<1x8x16xf32> to vector<8x16xf32>
    %325 = vector.broadcast %322 : f32 to vector<8x16xf32>
    %326 = arith.mulf %325, %324 : vector<8x16xf32>
    %327 = arith.addf %321, %326 : vector<8x16xf32>
    %c5_294 = arith.constant 5 : index
    %c6_295 = arith.constant 6 : index
    %328 = memref.load %arg2[%c5_294, %c6_295] : memref<8x8xf32, #tpu.memory_space<smem>>
    %c6_296 = arith.constant 6 : index
    %c0_297 = arith.constant 0 : index
    %c0_298 = arith.constant 0 : index
    %329 = vector.load %arg9[%c6_296, %c0_297, %c0_298] : memref<8x8x16xf32, #tpu.memory_space<vmem>>, vector<1x8x16xf32>
    %330 = vector.shape_cast %329 : vector<1x8x16xf32> to vector<8x16xf32>
    %331 = vector.broadcast %328 : f32 to vector<8x16xf32>
    %332 = arith.mulf %331, %330 : vector<8x16xf32>
    %333 = arith.addf %327, %332 : vector<8x16xf32>
    %c5_299 = arith.constant 5 : index
    %c7_300 = arith.constant 7 : index
    %334 = memref.load %arg2[%c5_299, %c7_300] : memref<8x8xf32, #tpu.memory_space<smem>>
    %c7_301 = arith.constant 7 : index
    %c0_302 = arith.constant 0 : index
    %c0_303 = arith.constant 0 : index
    %335 = vector.load %arg9[%c7_301, %c0_302, %c0_303] : memref<8x8x16xf32, #tpu.memory_space<vmem>>, vector<1x8x16xf32>
    %336 = vector.shape_cast %335 : vector<1x8x16xf32> to vector<8x16xf32>
    %337 = vector.broadcast %334 : f32 to vector<8x16xf32>
    %338 = arith.mulf %337, %336 : vector<8x16xf32>
    %339 = arith.addf %333, %338 : vector<8x16xf32>
    %340 = math.tanh %339 : vector<8x16xf32>
    %c0_304 = arith.constant 0 : index
    %c5_305 = arith.constant 5 : index
    %c0_306 = arith.constant 0 : index
    %c0_307 = arith.constant 0 : index
    %341 = vector.load %arg8[%c0_304, %c5_305, %c0_306, %c0_307] : memref<1x8x8x16xf32, #tpu.memory_space<vmem>>, vector<1x1x8x16xf32>
    %342 = vector.shape_cast %341 : vector<1x1x8x16xf32> to vector<8x16xf32>
    %343 = vector.shape_cast %340 : vector<8x16xf32> to vector<1x1x8x16xf32>
    tpu.vector_store %arg8[%c0_304, %c5_305, %c0_306, %c0_307], %343 {strides = array<i32>} : memref<1x8x8x16xf32, #tpu.memory_space<vmem>>, vector<1x1x8x16xf32>,
    %c0_308 = arith.constant 0 : index
    %c10 = arith.constant 10 : index
    %344 = vector.load %arg10[%c0_308, %c10] : memref<8x30xf32, #tpu.memory_space<vmem>>, vector<8x16xf32>
    %c0_309 = arith.constant 0 : index
    %c5_310 = arith.constant 5 : index
    %c0_311 = arith.constant 0 : index
    %c10_312 = arith.constant 10 : index
    %345 = vector.load %arg4[%c0_309, %c5_310, %c0_311, %c10_312] : memref<1x8x8x30xf32, #tpu.memory_space<vmem>>, vector<1x1x8x16xf32>
    %346 = vector.shape_cast %345 : vector<1x1x8x16xf32> to vector<8x16xf32>
    %347 = arith.mulf %346, %340 : vector<8x16xf32>
    %348 = arith.addf %344, %347 : vector<8x16xf32>
    %c0_313 = arith.constant 0 : index
    %c10_314 = arith.constant 10 : index
    %349 = vector.load %arg10[%c0_313, %c10_314] : memref<8x30xf32, #tpu.memory_space<vmem>>, vector<8x16xf32>
    tpu.vector_store %arg10[%c0_313, %c10_314], %348 {strides = array<i32>} : memref<8x30xf32, #tpu.memory_space<vmem>>, vector<8x16xf32>,
    %c6_315 = arith.constant 6 : index
    %c0_316 = arith.constant 0 : index
    %350 = memref.load %arg2[%c6_315, %c0_316] : memref<8x8xf32, #tpu.memory_space<smem>>
    %c0_317 = arith.constant 0 : index
    %c0_318 = arith.constant 0 : index
    %c0_319 = arith.constant 0 : index
    %351 = vector.load %arg9[%c0_317, %c0_318, %c0_319] : memref<8x8x16xf32, #tpu.memory_space<vmem>>, vector<1x8x16xf32>
    %352 = vector.shape_cast %351 : vector<1x8x16xf32> to vector<8x16xf32>
    %353 = vector.broadcast %350 : f32 to vector<8x16xf32>
    %354 = arith.mulf %353, %352 : vector<8x16xf32>
    %c6_320 = arith.constant 6 : index
    %c1_321 = arith.constant 1 : index
    %355 = memref.load %arg2[%c6_320, %c1_321] : memref<8x8xf32, #tpu.memory_space<smem>>
    %c1_322 = arith.constant 1 : index
    %c0_323 = arith.constant 0 : index
    %c0_324 = arith.constant 0 : index
    %356 = vector.load %arg9[%c1_322, %c0_323, %c0_324] : memref<8x8x16xf32, #tpu.memory_space<vmem>>, vector<1x8x16xf32>
    %357 = vector.shape_cast %356 : vector<1x8x16xf32> to vector<8x16xf32>
    %358 = vector.broadcast %355 : f32 to vector<8x16xf32>
    %359 = arith.mulf %358, %357 : vector<8x16xf32>
    %360 = arith.addf %354, %359 : vector<8x16xf32>
    %c6_325 = arith.constant 6 : index
    %c2_326 = arith.constant 2 : index
    %361 = memref.load %arg2[%c6_325, %c2_326] : memref<8x8xf32, #tpu.memory_space<smem>>
    %c2_327 = arith.constant 2 : index
    %c0_328 = arith.constant 0 : index
    %c0_329 = arith.constant 0 : index
    %362 = vector.load %arg9[%c2_327, %c0_328, %c0_329] : memref<8x8x16xf32, #tpu.memory_space<vmem>>, vector<1x8x16xf32>
    %363 = vector.shape_cast %362 : vector<1x8x16xf32> to vector<8x16xf32>
    %364 = vector.broadcast %361 : f32 to vector<8x16xf32>
    %365 = arith.mulf %364, %363 : vector<8x16xf32>
    %366 = arith.addf %360, %365 : vector<8x16xf32>
    %c6_330 = arith.constant 6 : index
    %c3_331 = arith.constant 3 : index
    %367 = memref.load %arg2[%c6_330, %c3_331] : memref<8x8xf32, #tpu.memory_space<smem>>
    %c3_332 = arith.constant 3 : index
    %c0_333 = arith.constant 0 : index
    %c0_334 = arith.constant 0 : index
    %368 = vector.load %arg9[%c3_332, %c0_333, %c0_334] : memref<8x8x16xf32, #tpu.memory_space<vmem>>, vector<1x8x16xf32>
    %369 = vector.shape_cast %368 : vector<1x8x16xf32> to vector<8x16xf32>
    %370 = vector.broadcast %367 : f32 to vector<8x16xf32>
    %371 = arith.mulf %370, %369 : vector<8x16xf32>
    %372 = arith.addf %366, %371 : vector<8x16xf32>
    %c6_335 = arith.constant 6 : index
    %c4_336 = arith.constant 4 : index
    %373 = memref.load %arg2[%c6_335, %c4_336] : memref<8x8xf32, #tpu.memory_space<smem>>
    %c4_337 = arith.constant 4 : index
    %c0_338 = arith.constant 0 : index
    %c0_339 = arith.constant 0 : index
    %374 = vector.load %arg9[%c4_337, %c0_338, %c0_339] : memref<8x8x16xf32, #tpu.memory_space<vmem>>, vector<1x8x16xf32>
    %375 = vector.shape_cast %374 : vector<1x8x16xf32> to vector<8x16xf32>
    %376 = vector.broadcast %373 : f32 to vector<8x16xf32>
    %377 = arith.mulf %376, %375 : vector<8x16xf32>
    %378 = arith.addf %372, %377 : vector<8x16xf32>
    %c6_340 = arith.constant 6 : index
    %c5_341 = arith.constant 5 : index
    %379 = memref.load %arg2[%c6_340, %c5_341] : memref<8x8xf32, #tpu.memory_space<smem>>
    %c5_342 = arith.constant 5 : index
    %c0_343 = arith.constant 0 : index
    %c0_344 = arith.constant 0 : index
    %380 = vector.load %arg9[%c5_342, %c0_343, %c0_344] : memref<8x8x16xf32, #tpu.memory_space<vmem>>, vector<1x8x16xf32>
    %381 = vector.shape_cast %380 : vector<1x8x16xf32> to vector<8x16xf32>
    %382 = vector.broadcast %379 : f32 to vector<8x16xf32>
    %383 = arith.mulf %382, %381 : vector<8x16xf32>
    %384 = arith.addf %378, %383 : vector<8x16xf32>
    %c6_345 = arith.constant 6 : index
    %c6_346 = arith.constant 6 : index
    %385 = memref.load %arg2[%c6_345, %c6_346] : memref<8x8xf32, #tpu.memory_space<smem>>
    %c6_347 = arith.constant 6 : index
    %c0_348 = arith.constant 0 : index
    %c0_349 = arith.constant 0 : index
    %386 = vector.load %arg9[%c6_347, %c0_348, %c0_349] : memref<8x8x16xf32, #tpu.memory_space<vmem>>, vector<1x8x16xf32>
    %387 = vector.shape_cast %386 : vector<1x8x16xf32> to vector<8x16xf32>
    %388 = vector.broadcast %385 : f32 to vector<8x16xf32>
    %389 = arith.mulf %388, %387 : vector<8x16xf32>
    %390 = arith.addf %384, %389 : vector<8x16xf32>
    %c6_350 = arith.constant 6 : index
    %c7_351 = arith.constant 7 : index
    %391 = memref.load %arg2[%c6_350, %c7_351] : memref<8x8xf32, #tpu.memory_space<smem>>
    %c7_352 = arith.constant 7 : index
    %c0_353 = arith.constant 0 : index
    %c0_354 = arith.constant 0 : index
    %392 = vector.load %arg9[%c7_352, %c0_353, %c0_354] : memref<8x8x16xf32, #tpu.memory_space<vmem>>, vector<1x8x16xf32>
    %393 = vector.shape_cast %392 : vector<1x8x16xf32> to vector<8x16xf32>
    %394 = vector.broadcast %391 : f32 to vector<8x16xf32>
    %395 = arith.mulf %394, %393 : vector<8x16xf32>
    %396 = arith.addf %390, %395 : vector<8x16xf32>
    %397 = math.tanh %396 : vector<8x16xf32>
    %c0_355 = arith.constant 0 : index
    %c6_356 = arith.constant 6 : index
    %c0_357 = arith.constant 0 : index
    %c0_358 = arith.constant 0 : index
    %398 = vector.load %arg8[%c0_355, %c6_356, %c0_357, %c0_358] : memref<1x8x8x16xf32, #tpu.memory_space<vmem>>, vector<1x1x8x16xf32>
    %399 = vector.shape_cast %398 : vector<1x1x8x16xf32> to vector<8x16xf32>
    %400 = vector.shape_cast %397 : vector<8x16xf32> to vector<1x1x8x16xf32>
    tpu.vector_store %arg8[%c0_355, %c6_356, %c0_357, %c0_358], %400 {strides = array<i32>} : memref<1x8x8x16xf32, #tpu.memory_space<vmem>>, vector<1x1x8x16xf32>,
    %c0_359 = arith.constant 0 : index
    %c12 = arith.constant 12 : index
    %401 = vector.load %arg10[%c0_359, %c12] : memref<8x30xf32, #tpu.memory_space<vmem>>, vector<8x16xf32>
    %c0_360 = arith.constant 0 : index
    %c6_361 = arith.constant 6 : index
    %c0_362 = arith.constant 0 : index
    %c12_363 = arith.constant 12 : index
    %402 = vector.load %arg4[%c0_360, %c6_361, %c0_362, %c12_363] : memref<1x8x8x30xf32, #tpu.memory_space<vmem>>, vector<1x1x8x16xf32>
    %403 = vector.shape_cast %402 : vector<1x1x8x16xf32> to vector<8x16xf32>
    %404 = arith.mulf %403, %397 : vector<8x16xf32>
    %405 = arith.addf %401, %404 : vector<8x16xf32>
    %c0_364 = arith.constant 0 : index
    %c12_365 = arith.constant 12 : index
    %406 = vector.load %arg10[%c0_364, %c12_365] : memref<8x30xf32, #tpu.memory_space<vmem>>, vector<8x16xf32>
    tpu.vector_store %arg10[%c0_364, %c12_365], %405 {strides = array<i32>} : memref<8x30xf32, #tpu.memory_space<vmem>>, vector<8x16xf32>,
    %c7_366 = arith.constant 7 : index
    %c0_367 = arith.constant 0 : index
    %407 = memref.load %arg2[%c7_366, %c0_367] : memref<8x8xf32, #tpu.memory_space<smem>>
    %c0_368 = arith.constant 0 : index
    %c0_369 = arith.constant 0 : index
    %c0_370 = arith.constant 0 : index
    %408 = vector.load %arg9[%c0_368, %c0_369, %c0_370] : memref<8x8x16xf32, #tpu.memory_space<vmem>>, vector<1x8x16xf32>
    %409 = vector.shape_cast %408 : vector<1x8x16xf32> to vector<8x16xf32>
    %410 = vector.broadcast %407 : f32 to vector<8x16xf32>
    %411 = arith.mulf %410, %409 : vector<8x16xf32>
    %c7_371 = arith.constant 7 : index
    %c1_372 = arith.constant 1 : index
    %412 = memref.load %arg2[%c7_371, %c1_372] : memref<8x8xf32, #tpu.memory_space<smem>>
    %c1_373 = arith.constant 1 : index
    %c0_374 = arith.constant 0 : index
    %c0_375 = arith.constant 0 : index
    %413 = vector.load %arg9[%c1_373, %c0_374, %c0_375] : memref<8x8x16xf32, #tpu.memory_space<vmem>>, vector<1x8x16xf32>
    %414 = vector.shape_cast %413 : vector<1x8x16xf32> to vector<8x16xf32>
    %415 = vector.broadcast %412 : f32 to vector<8x16xf32>
    %416 = arith.mulf %415, %414 : vector<8x16xf32>
    %417 = arith.addf %411, %416 : vector<8x16xf32>
    %c7_376 = arith.constant 7 : index
    %c2_377 = arith.constant 2 : index
    %418 = memref.load %arg2[%c7_376, %c2_377] : memref<8x8xf32, #tpu.memory_space<smem>>
    %c2_378 = arith.constant 2 : index
    %c0_379 = arith.constant 0 : index
    %c0_380 = arith.constant 0 : index
    %419 = vector.load %arg9[%c2_378, %c0_379, %c0_380] : memref<8x8x16xf32, #tpu.memory_space<vmem>>, vector<1x8x16xf32>
    %420 = vector.shape_cast %419 : vector<1x8x16xf32> to vector<8x16xf32>
    %421 = vector.broadcast %418 : f32 to vector<8x16xf32>
    %422 = arith.mulf %421, %420 : vector<8x16xf32>
    %423 = arith.addf %417, %422 : vector<8x16xf32>
    %c7_381 = arith.constant 7 : index
    %c3_382 = arith.constant 3 : index
    %424 = memref.load %arg2[%c7_381, %c3_382] : memref<8x8xf32, #tpu.memory_space<smem>>
    %c3_383 = arith.constant 3 : index
    %c0_384 = arith.constant 0 : index
    %c0_385 = arith.constant 0 : index
    %425 = vector.load %arg9[%c3_383, %c0_384, %c0_385] : memref<8x8x16xf32, #tpu.memory_space<vmem>>, vector<1x8x16xf32>
    %426 = vector.shape_cast %425 : vector<1x8x16xf32> to vector<8x16xf32>
    %427 = vector.broadcast %424 : f32 to vector<8x16xf32>
    %428 = arith.mulf %427, %426 : vector<8x16xf32>
    %429 = arith.addf %423, %428 : vector<8x16xf32>
    %c7_386 = arith.constant 7 : index
    %c4_387 = arith.constant 4 : index
    %430 = memref.load %arg2[%c7_386, %c4_387] : memref<8x8xf32, #tpu.memory_space<smem>>
    %c4_388 = arith.constant 4 : index
    %c0_389 = arith.constant 0 : index
    %c0_390 = arith.constant 0 : index
    %431 = vector.load %arg9[%c4_388, %c0_389, %c0_390] : memref<8x8x16xf32, #tpu.memory_space<vmem>>, vector<1x8x16xf32>
    %432 = vector.shape_cast %431 : vector<1x8x16xf32> to vector<8x16xf32>
    %433 = vector.broadcast %430 : f32 to vector<8x16xf32>
    %434 = arith.mulf %433, %432 : vector<8x16xf32>
    %435 = arith.addf %429, %434 : vector<8x16xf32>
    %c7_391 = arith.constant 7 : index
    %c5_392 = arith.constant 5 : index
    %436 = memref.load %arg2[%c7_391, %c5_392] : memref<8x8xf32, #tpu.memory_space<smem>>
    %c5_393 = arith.constant 5 : index
    %c0_394 = arith.constant 0 : index
    %c0_395 = arith.constant 0 : index
    %437 = vector.load %arg9[%c5_393, %c0_394, %c0_395] : memref<8x8x16xf32, #tpu.memory_space<vmem>>, vector<1x8x16xf32>
    %438 = vector.shape_cast %437 : vector<1x8x16xf32> to vector<8x16xf32>
    %439 = vector.broadcast %436 : f32 to vector<8x16xf32>
    %440 = arith.mulf %439, %438 : vector<8x16xf32>
    %441 = arith.addf %435, %440 : vector<8x16xf32>
    %c7_396 = arith.constant 7 : index
    %c6_397 = arith.constant 6 : index
    %442 = memref.load %arg2[%c7_396, %c6_397] : memref<8x8xf32, #tpu.memory_space<smem>>
    %c6_398 = arith.constant 6 : index
    %c0_399 = arith.constant 0 : index
    %c0_400 = arith.constant 0 : index
    %443 = vector.load %arg9[%c6_398, %c0_399, %c0_400] : memref<8x8x16xf32, #tpu.memory_space<vmem>>, vector<1x8x16xf32>
    %444 = vector.shape_cast %443 : vector<1x8x16xf32> to vector<8x16xf32>
    %445 = vector.broadcast %442 : f32 to vector<8x16xf32>
    %446 = arith.mulf %445, %444 : vector<8x16xf32>
    %447 = arith.addf %441, %446 : vector<8x16xf32>
    %c7_401 = arith.constant 7 : index
    %c7_402 = arith.constant 7 : index
    %448 = memref.load %arg2[%c7_401, %c7_402] : memref<8x8xf32, #tpu.memory_space<smem>>
    %c7_403 = arith.constant 7 : index
    %c0_404 = arith.constant 0 : index
    %c0_405 = arith.constant 0 : index
    %449 = vector.load %arg9[%c7_403, %c0_404, %c0_405] : memref<8x8x16xf32, #tpu.memory_space<vmem>>, vector<1x8x16xf32>
    %450 = vector.shape_cast %449 : vector<1x8x16xf32> to vector<8x16xf32>
    %451 = vector.broadcast %448 : f32 to vector<8x16xf32>
    %452 = arith.mulf %451, %450 : vector<8x16xf32>
    %453 = arith.addf %447, %452 : vector<8x16xf32>
    %454 = math.tanh %453 : vector<8x16xf32>
    %c0_406 = arith.constant 0 : index
    %c7_407 = arith.constant 7 : index
    %c0_408 = arith.constant 0 : index
    %c0_409 = arith.constant 0 : index
    %455 = vector.load %arg8[%c0_406, %c7_407, %c0_408, %c0_409] : memref<1x8x8x16xf32, #tpu.memory_space<vmem>>, vector<1x1x8x16xf32>
    %456 = vector.shape_cast %455 : vector<1x1x8x16xf32> to vector<8x16xf32>
    %457 = vector.shape_cast %454 : vector<8x16xf32> to vector<1x1x8x16xf32>
    tpu.vector_store %arg8[%c0_406, %c7_407, %c0_408, %c0_409], %457 {strides = array<i32>} : memref<1x8x8x16xf32, #tpu.memory_space<vmem>>, vector<1x1x8x16xf32>,
    %c0_410 = arith.constant 0 : index
    %c14 = arith.constant 14 : index
    %458 = vector.load %arg10[%c0_410, %c14] : memref<8x30xf32, #tpu.memory_space<vmem>>, vector<8x16xf32>
    %c0_411 = arith.constant 0 : index
    %c7_412 = arith.constant 7 : index
    %c0_413 = arith.constant 0 : index
    %c14_414 = arith.constant 14 : index
    %459 = vector.load %arg4[%c0_411, %c7_412, %c0_413, %c14_414] : memref<1x8x8x30xf32, #tpu.memory_space<vmem>>, vector<1x1x8x16xf32>
    %460 = vector.shape_cast %459 : vector<1x1x8x16xf32> to vector<8x16xf32>
    %461 = arith.mulf %460, %454 : vector<8x16xf32>
    %462 = arith.addf %458, %461 : vector<8x16xf32>
    %c0_415 = arith.constant 0 : index
    %c14_416 = arith.constant 14 : index
    %463 = vector.load %arg10[%c0_415, %c14_416] : memref<8x30xf32, #tpu.memory_space<vmem>>, vector<8x16xf32>
    tpu.vector_store %arg10[%c0_415, %c14_416], %462 {strides = array<i32>} : memref<8x30xf32, #tpu.memory_space<vmem>>, vector<8x16xf32>,
    %c0_417 = arith.constant 0 : index
    %c0_418 = arith.constant 0 : index
    %c0_419 = arith.constant 0 : index
    %464 = vector.load %arg5[%c0_417, %c0_418, %c0_419] : memref<1x8x30xf32, #tpu.memory_space<vmem>>, vector<1x8x30xf32>
    %465 = vector.shape_cast %464 : vector<1x8x30xf32> to vector<8x30xf32>
    %cst_420 = arith.constant 1.000000e-07 : f32
    %466 = vector.broadcast %cst_420 : f32 to vector<8x30xf32>
    %467 = arith.addf %465, %466 : vector<8x30xf32>
    %468 = tpu.reciprocal %467 : vector<8x30xf32> -> vector<8x30xf32>
    %c0_421 = arith.constant 0 : index
    %c0_422 = arith.constant 0 : index
    %c0_423 = arith.constant 0 : index
    %469 = vector.load %arg3[%c0_421, %c0_422, %c0_423] : memref<1x8x30xf32, #tpu.memory_space<vmem>>, vector<1x8x30xf32>
    %470 = vector.shape_cast %469 : vector<1x8x30xf32> to vector<8x30xf32>
    %c0_424 = arith.constant 0 : index
    %c0_425 = arith.constant 0 : index
    %471 = vector.load %arg10[%c0_424, %c0_425] : memref<8x30xf32, #tpu.memory_space<vmem>>, vector<8x30xf32>
    %472 = arith.subf %470, %471 : vector<8x30xf32>
    %473 = arith.mulf %472, %468 : vector<8x30xf32>
    %c0_426 = arith.constant 0 : index
    %c0_427 = arith.constant 0 : index
    %c0_428 = arith.constant 0 : index
    %c0_429 = arith.constant 0 : index
    %474 = vector.load %arg8[%c0_426, %c0_427, %c0_428, %c0_429] : memref<1x8x8x16xf32, #tpu.memory_space<vmem>>, vector<1x1x8x16xf32>
    %475 = vector.shape_cast %474 : vector<1x1x8x16xf32> to vector<8x16xf32>
    %476 = vector.extract_strided_slice %473 {offsets = [0, 0], sizes = [8, 16], strides = [1, 1]} : vector<8x30xf32> to vector<8x16xf32>
    %c0_430 = arith.constant 0 : index
    %c0_431 = arith.constant 0 : index
    %c0_432 = arith.constant 0 : index
    %c0_433 = arith.constant 0 : index
    %477 = vector.load %arg4[%c0_430, %c0_431, %c0_432, %c0_433] : memref<1x8x8x30xf32, #tpu.memory_space<vmem>>, vector<1x1x8x16xf32>
    %478 = vector.shape_cast %477 : vector<1x1x8x16xf32> to vector<8x16xf32>
    %479 = arith.mulf %476, %478 : vector<8x16xf32>
    %480 = arith.addf %475, %479 : vector<8x16xf32>
    %c0_434 = arith.constant 0 : index
    %c0_435 = arith.constant 0 : index
    %c0_436 = arith.constant 0 : index
    %c0_437 = arith.constant 0 : index
    %481 = vector.load %arg8[%c0_434, %c0_435, %c0_436, %c0_437] : memref<1x8x8x16xf32, #tpu.memory_space<vmem>>, vector<1x1x8x16xf32>
    %482 = vector.shape_cast %481 : vector<1x1x8x16xf32> to vector<8x16xf32>
    %483 = vector.shape_cast %480 : vector<8x16xf32> to vector<1x1x8x16xf32>
    tpu.vector_store %arg8[%c0_434, %c0_435, %c0_436, %c0_437], %483 {strides = array<i32>} : memref<1x8x8x16xf32, #tpu.memory_space<vmem>>, vector<1x1x8x16xf32>,
    %c0_438 = arith.constant 0 : index
    %c1_439 = arith.constant 1 : index
    %c0_440 = arith.constant 0 : index
    %c0_441 = arith.constant 0 : index
    %484 = vector.load %arg8[%c0_438, %c1_439, %c0_440, %c0_441] : memref<1x8x8x16xf32, #tpu.memory_space<vmem>>, vector<1x1x8x16xf32>
    %485 = vector.shape_cast %484 : vector<1x1x8x16xf32> to vector<8x16xf32>
    %486 = vector.extract_strided_slice %473 {offsets = [0, 2], sizes = [8, 16], strides = [1, 1]} : vector<8x30xf32> to vector<8x16xf32>
    %c0_442 = arith.constant 0 : index
    %c1_443 = arith.constant 1 : index
    %c0_444 = arith.constant 0 : index
    %c2_445 = arith.constant 2 : index
    %487 = vector.load %arg4[%c0_442, %c1_443, %c0_444, %c2_445] : memref<1x8x8x30xf32, #tpu.memory_space<vmem>>, vector<1x1x8x16xf32>
    %488 = vector.shape_cast %487 : vector<1x1x8x16xf32> to vector<8x16xf32>
    %489 = arith.mulf %486, %488 : vector<8x16xf32>
    %490 = arith.addf %485, %489 : vector<8x16xf32>
    %c0_446 = arith.constant 0 : index
    %c1_447 = arith.constant 1 : index
    %c0_448 = arith.constant 0 : index
    %c0_449 = arith.constant 0 : index
    %491 = vector.load %arg8[%c0_446, %c1_447, %c0_448, %c0_449] : memref<1x8x8x16xf32, #tpu.memory_space<vmem>>, vector<1x1x8x16xf32>
    %492 = vector.shape_cast %491 : vector<1x1x8x16xf32> to vector<8x16xf32>
    %493 = vector.shape_cast %490 : vector<8x16xf32> to vector<1x1x8x16xf32>
    tpu.vector_store %arg8[%c0_446, %c1_447, %c0_448, %c0_449], %493 {strides = array<i32>} : memref<1x8x8x16xf32, #tpu.memory_space<vmem>>, vector<1x1x8x16xf32>,
    %c0_450 = arith.constant 0 : index
    %c2_451 = arith.constant 2 : index
    %c0_452 = arith.constant 0 : index
    %c0_453 = arith.constant 0 : index
    %494 = vector.load %arg8[%c0_450, %c2_451, %c0_452, %c0_453] : memref<1x8x8x16xf32, #tpu.memory_space<vmem>>, vector<1x1x8x16xf32>
    %495 = vector.shape_cast %494 : vector<1x1x8x16xf32> to vector<8x16xf32>
    %496 = vector.extract_strided_slice %473 {offsets = [0, 4], sizes = [8, 16], strides = [1, 1]} : vector<8x30xf32> to vector<8x16xf32>
    %c0_454 = arith.constant 0 : index
    %c2_455 = arith.constant 2 : index
    %c0_456 = arith.constant 0 : index
    %c4_457 = arith.constant 4 : index
    %497 = vector.load %arg4[%c0_454, %c2_455, %c0_456, %c4_457] : memref<1x8x8x30xf32, #tpu.memory_space<vmem>>, vector<1x1x8x16xf32>
    %498 = vector.shape_cast %497 : vector<1x1x8x16xf32> to vector<8x16xf32>
    %499 = arith.mulf %496, %498 : vector<8x16xf32>
    %500 = arith.addf %495, %499 : vector<8x16xf32>
    %c0_458 = arith.constant 0 : index
    %c2_459 = arith.constant 2 : index
    %c0_460 = arith.constant 0 : index
    %c0_461 = arith.constant 0 : index
    %501 = vector.load %arg8[%c0_458, %c2_459, %c0_460, %c0_461] : memref<1x8x8x16xf32, #tpu.memory_space<vmem>>, vector<1x1x8x16xf32>
    %502 = vector.shape_cast %501 : vector<1x1x8x16xf32> to vector<8x16xf32>
    %503 = vector.shape_cast %500 : vector<8x16xf32> to vector<1x1x8x16xf32>
    tpu.vector_store %arg8[%c0_458, %c2_459, %c0_460, %c0_461], %503 {strides = array<i32>} : memref<1x8x8x16xf32, #tpu.memory_space<vmem>>, vector<1x1x8x16xf32>,
    %c0_462 = arith.constant 0 : index
    %c3_463 = arith.constant 3 : index
    %c0_464 = arith.constant 0 : index
    %c0_465 = arith.constant 0 : index
    %504 = vector.load %arg8[%c0_462, %c3_463, %c0_464, %c0_465] : memref<1x8x8x16xf32, #tpu.memory_space<vmem>>, vector<1x1x8x16xf32>
    %505 = vector.shape_cast %504 : vector<1x1x8x16xf32> to vector<8x16xf32>
    %506 = vector.extract_strided_slice %473 {offsets = [0, 6], sizes = [8, 16], strides = [1, 1]} : vector<8x30xf32> to vector<8x16xf32>
    %c0_466 = arith.constant 0 : index
    %c3_467 = arith.constant 3 : index
    %c0_468 = arith.constant 0 : index
    %c6_469 = arith.constant 6 : index
    %507 = vector.load %arg4[%c0_466, %c3_467, %c0_468, %c6_469] : memref<1x8x8x30xf32, #tpu.memory_space<vmem>>, vector<1x1x8x16xf32>
    %508 = vector.shape_cast %507 : vector<1x1x8x16xf32> to vector<8x16xf32>
    %509 = arith.mulf %506, %508 : vector<8x16xf32>
    %510 = arith.addf %505, %509 : vector<8x16xf32>
    %c0_470 = arith.constant 0 : index
    %c3_471 = arith.constant 3 : index
    %c0_472 = arith.constant 0 : index
    %c0_473 = arith.constant 0 : index
    %511 = vector.load %arg8[%c0_470, %c3_471, %c0_472, %c0_473] : memref<1x8x8x16xf32, #tpu.memory_space<vmem>>, vector<1x1x8x16xf32>
    %512 = vector.shape_cast %511 : vector<1x1x8x16xf32> to vector<8x16xf32>
    %513 = vector.shape_cast %510 : vector<8x16xf32> to vector<1x1x8x16xf32>
    tpu.vector_store %arg8[%c0_470, %c3_471, %c0_472, %c0_473], %513 {strides = array<i32>} : memref<1x8x8x16xf32, #tpu.memory_space<vmem>>, vector<1x1x8x16xf32>,
    %c0_474 = arith.constant 0 : index
    %c4_475 = arith.constant 4 : index
    %c0_476 = arith.constant 0 : index
    %c0_477 = arith.constant 0 : index
    %514 = vector.load %arg8[%c0_474, %c4_475, %c0_476, %c0_477] : memref<1x8x8x16xf32, #tpu.memory_space<vmem>>, vector<1x1x8x16xf32>
    %515 = vector.shape_cast %514 : vector<1x1x8x16xf32> to vector<8x16xf32>
    %516 = vector.extract_strided_slice %473 {offsets = [0, 8], sizes = [8, 16], strides = [1, 1]} : vector<8x30xf32> to vector<8x16xf32>
    %c0_478 = arith.constant 0 : index
    %c4_479 = arith.constant 4 : index
    %c0_480 = arith.constant 0 : index
    %c8_481 = arith.constant 8 : index
    %517 = vector.load %arg4[%c0_478, %c4_479, %c0_480, %c8_481] : memref<1x8x8x30xf32, #tpu.memory_space<vmem>>, vector<1x1x8x16xf32>
    %518 = vector.shape_cast %517 : vector<1x1x8x16xf32> to vector<8x16xf32>
    %519 = arith.mulf %516, %518 : vector<8x16xf32>
    %520 = arith.addf %515, %519 : vector<8x16xf32>
    %c0_482 = arith.constant 0 : index
    %c4_483 = arith.constant 4 : index
    %c0_484 = arith.constant 0 : index
    %c0_485 = arith.constant 0 : index
    %521 = vector.load %arg8[%c0_482, %c4_483, %c0_484, %c0_485] : memref<1x8x8x16xf32, #tpu.memory_space<vmem>>, vector<1x1x8x16xf32>
    %522 = vector.shape_cast %521 : vector<1x1x8x16xf32> to vector<8x16xf32>
    %523 = vector.shape_cast %520 : vector<8x16xf32> to vector<1x1x8x16xf32>
    tpu.vector_store %arg8[%c0_482, %c4_483, %c0_484, %c0_485], %523 {strides = array<i32>} : memref<1x8x8x16xf32, #tpu.memory_space<vmem>>, vector<1x1x8x16xf32>,
    %c0_486 = arith.constant 0 : index
    %c5_487 = arith.constant 5 : index
    %c0_488 = arith.constant 0 : index
    %c0_489 = arith.constant 0 : index
    %524 = vector.load %arg8[%c0_486, %c5_487, %c0_488, %c0_489] : memref<1x8x8x16xf32, #tpu.memory_space<vmem>>, vector<1x1x8x16xf32>
    %525 = vector.shape_cast %524 : vector<1x1x8x16xf32> to vector<8x16xf32>
    %526 = vector.extract_strided_slice %473 {offsets = [0, 10], sizes = [8, 16], strides = [1, 1]} : vector<8x30xf32> to vector<8x16xf32>
    %c0_490 = arith.constant 0 : index
    %c5_491 = arith.constant 5 : index
    %c0_492 = arith.constant 0 : index
    %c10_493 = arith.constant 10 : index
    %527 = vector.load %arg4[%c0_490, %c5_491, %c0_492, %c10_493] : memref<1x8x8x30xf32, #tpu.memory_space<vmem>>, vector<1x1x8x16xf32>
    %528 = vector.shape_cast %527 : vector<1x1x8x16xf32> to vector<8x16xf32>
    %529 = arith.mulf %526, %528 : vector<8x16xf32>
    %530 = arith.addf %525, %529 : vector<8x16xf32>
    %c0_494 = arith.constant 0 : index
    %c5_495 = arith.constant 5 : index
    %c0_496 = arith.constant 0 : index
    %c0_497 = arith.constant 0 : index
    %531 = vector.load %arg8[%c0_494, %c5_495, %c0_496, %c0_497] : memref<1x8x8x16xf32, #tpu.memory_space<vmem>>, vector<1x1x8x16xf32>
    %532 = vector.shape_cast %531 : vector<1x1x8x16xf32> to vector<8x16xf32>
    %533 = vector.shape_cast %530 : vector<8x16xf32> to vector<1x1x8x16xf32>
    tpu.vector_store %arg8[%c0_494, %c5_495, %c0_496, %c0_497], %533 {strides = array<i32>} : memref<1x8x8x16xf32, #tpu.memory_space<vmem>>, vector<1x1x8x16xf32>,
    %c0_498 = arith.constant 0 : index
    %c6_499 = arith.constant 6 : index
    %c0_500 = arith.constant 0 : index
    %c0_501 = arith.constant 0 : index
    %534 = vector.load %arg8[%c0_498, %c6_499, %c0_500, %c0_501] : memref<1x8x8x16xf32, #tpu.memory_space<vmem>>, vector<1x1x8x16xf32>
    %535 = vector.shape_cast %534 : vector<1x1x8x16xf32> to vector<8x16xf32>
    %536 = vector.extract_strided_slice %473 {offsets = [0, 12], sizes = [8, 16], strides = [1, 1]} : vector<8x30xf32> to vector<8x16xf32>
    %c0_502 = arith.constant 0 : index
    %c6_503 = arith.constant 6 : index
    %c0_504 = arith.constant 0 : index
    %c12_505 = arith.constant 12 : index
    %537 = vector.load %arg4[%c0_502, %c6_503, %c0_504, %c12_505] : memref<1x8x8x30xf32, #tpu.memory_space<vmem>>, vector<1x1x8x16xf32>
    %538 = vector.shape_cast %537 : vector<1x1x8x16xf32> to vector<8x16xf32>
    %539 = arith.mulf %536, %538 : vector<8x16xf32>
    %540 = arith.addf %535, %539 : vector<8x16xf32>
    %c0_506 = arith.constant 0 : index
    %c6_507 = arith.constant 6 : index
    %c0_508 = arith.constant 0 : index
    %c0_509 = arith.constant 0 : index
    %541 = vector.load %arg8[%c0_506, %c6_507, %c0_508, %c0_509] : memref<1x8x8x16xf32, #tpu.memory_space<vmem>>, vector<1x1x8x16xf32>
    %542 = vector.shape_cast %541 : vector<1x1x8x16xf32> to vector<8x16xf32>
    %543 = vector.shape_cast %540 : vector<8x16xf32> to vector<1x1x8x16xf32>
    tpu.vector_store %arg8[%c0_506, %c6_507, %c0_508, %c0_509], %543 {strides = array<i32>} : memref<1x8x8x16xf32, #tpu.memory_space<vmem>>, vector<1x1x8x16xf32>,
    %c0_510 = arith.constant 0 : index
    %c7_511 = arith.constant 7 : index
    %c0_512 = arith.constant 0 : index
    %c0_513 = arith.constant 0 : index
    %544 = vector.load %arg8[%c0_510, %c7_511, %c0_512, %c0_513] : memref<1x8x8x16xf32, #tpu.memory_space<vmem>>, vector<1x1x8x16xf32>
    %545 = vector.shape_cast %544 : vector<1x1x8x16xf32> to vector<8x16xf32>
    %546 = vector.extract_strided_slice %473 {offsets = [0, 14], sizes = [8, 16], strides = [1, 1]} : vector<8x30xf32> to vector<8x16xf32>
    %c0_514 = arith.constant 0 : index
    %c7_515 = arith.constant 7 : index
    %c0_516 = arith.constant 0 : index
    %c14_517 = arith.constant 14 : index
    %547 = vector.load %arg4[%c0_514, %c7_515, %c0_516, %c14_517] : memref<1x8x8x30xf32, #tpu.memory_space<vmem>>, vector<1x1x8x16xf32>
    %548 = vector.shape_cast %547 : vector<1x1x8x16xf32> to vector<8x16xf32>
    %549 = arith.mulf %546, %548 : vector<8x16xf32>
    %550 = arith.addf %545, %549 : vector<8x16xf32>
    %c0_518 = arith.constant 0 : index
    %c7_519 = arith.constant 7 : index
    %c0_520 = arith.constant 0 : index
    %c0_521 = arith.constant 0 : index
    %551 = vector.load %arg8[%c0_518, %c7_519, %c0_520, %c0_521] : memref<1x8x8x16xf32, #tpu.memory_space<vmem>>, vector<1x1x8x16xf32>
    %552 = vector.shape_cast %551 : vector<1x1x8x16xf32> to vector<8x16xf32>
    %553 = vector.shape_cast %550 : vector<8x16xf32> to vector<1x1x8x16xf32>
    tpu.vector_store %arg8[%c0_518, %c7_519, %c0_520, %c0_521], %553 {strides = array<i32>} : memref<1x8x8x16xf32, #tpu.memory_space<vmem>>, vector<1x1x8x16xf32>,
    return
  }
  func.func @transform_0(%arg0: i32, %arg1: i32) -> (i32, i32) {
    %c0_i32 = arith.constant 0 : i32
    %c0_i32_0 = arith.constant 0 : i32
    %c0_i32_1 = arith.constant 0 : i32
    return %c0_i32, %c0_i32_0 : i32, i32
  }
  func.func @transform_1(%arg0: i32, %arg1: i32) -> (i32, i32, i32) {
    %c0_i32 = arith.constant 0 : i32
    %c0_i32_0 = arith.constant 0 : i32
    return %arg0, %arg1, %c0_i32 : i32, i32, i32
  }
  func.func @transform_2(%arg0: i32, %arg1: i32) -> (i32, i32, i32, i32) {
    %c0_i32 = arith.constant 0 : i32
    %c0_i32_0 = arith.constant 0 : i32
    %c0_i32_1 = arith.constant 0 : i32
    return %arg0, %c0_i32, %arg1, %c0_i32_0 : i32, i32, i32, i32
  }
  func.func @transform_3(%arg0: i32, %arg1: i32) -> (i32, i32, i32) {
    %c0_i32 = arith.constant 0 : i32
    %c0_i32_0 = arith.constant 0 : i32
    return %arg0, %arg1, %c0_i32 : i32, i32, i32
  }
  func.func @transform_4(%arg0: i32, %arg1: i32) -> (i32, i32, i32, i32) {
    %c0_i32 = arith.constant 0 : i32
    %c0_i32_0 = arith.constant 0 : i32
    %c0_i32_1 = arith.constant 0 : i32
    return %arg0, %c0_i32, %arg1, %c0_i32_0 : i32, i32, i32, i32
  }
  func.func @transform_5(%arg0: i32, %arg1: i32) -> (i32, i32, i32, i32) {
    %c0_i32 = arith.constant 0 : i32
    %c0_i32_0 = arith.constant 0 : i32
    %c0_i32_1 = arith.constant 0 : i32
    return %arg0, %c0_i32, %arg1, %c0_i32_0 : i32, i32, i32, i32
  }
  func.func @transform_6(%arg0: i32, %arg1: i32) -> (i32, i32, i32, i32) {
    %c0_i32 = arith.constant 0 : i32
    %c0_i32_0 = arith.constant 0 : i32
    %c0_i32_1 = arith.constant 0 : i32
    return %arg0, %c0_i32, %arg1, %c0_i32_0 : i32, i32, i32, i32
  }
}

</mosaic_0001>

<bundles_post_ra>
// kernel: rnd_forward.1
= control target key start
LH: loop header
LB: loop body
LE: loop exit
PB: predicated region body
PF: predicated region fallthrough
CT: control target
= control target key end

     0   :  { %s2403_s0 = inlined_call_operand.vmem [shape: f32[8,8], index: 0, kind: input, shape index: {}]   ;;  %s2404_s1 = inlined_call_operand.hbm [shape: f32[2,16,30], index: 1, kind: input, shape index: {}]   ;;  %s2405_s2 = inlined_call_operand.hbm [shape: f32[2,8,16,30], index: 2, kind: input, shape index: {}]   ;;  %s2406_s3 = inlined_call_operand.hbm [shape: f32[2,16,30], index: 3, kind: input, shape index: {}]   ;;  %s2407_s4 = inlined_call_operand.hbm [shape: f32[2,8,16,16], index: 4, kind: input, shape index: {}]   ;;  %s2408_s5 = inlined_call_operand.hbm [shape: f32[2,8,16,16], index: 5, kind: input, shape index: {}]   ;;  %s2409_s6 = inlined_call_operand.hbm [shape: f32[2,8,16,16], index: 6, kind: output, shape index: {}]  }
   0x1   :  { %2424 = sst [smem:[#allocation29_spill]] %s2403_s0 }
   0x2   :  { %2425 = sst [smem:[#allocation30_spill]] %s2404_s1 }
   0x3   :  { %2426 = sst [smem:[#allocation31_spill]] %s2405_s2 }
   0x4   :  { %2427 = sst [smem:[#allocation32_spill]] %s2406_s3 }
   0x5   :  { %2428 = sst [smem:[#allocation33_spill]] %s2407_s4 }
   0x6   :  { %2429 = sst [smem:[#allocation34_spill]] %s2408_s5 }
   0x7   :  { %2430 = sst [smem:[#allocation35_spill]] %s2409_s6 }
   0x8   :  { %11 = vsyncpa [#allocation7], 0 }
   0x9   :  { %12 = vsyncpa [#allocation5], 0 }
   0xa   :  { %14 = vsyncpa [#allocation5 + $0x1], 0 }
   0xb   :  { %15 = vsyncpa [#allocation10], 0 }
   0xc   :  { %17 = vsyncpa [#allocation10 + $0x1], 0 }
   0xd   :  { %18 = vsyncpa [#allocation13], 0 }
   0xe   :  { %20 = vsyncpa [#allocation13 + $0x1], 0 }
   0xf   :  { %21 = vsyncpa [#allocation6], 0 }
  0x10   :  { %23 = vsyncpa [#allocation6 + $0x1], 0  ;;  %s1811_s21 = smov 0   ;;  %s1813_s22 = smov 0  }
  0x11   :  { %s1815_s23 = smov 0   ;;  %s1817_s24 = smov 0  }
  0x12   :  { %s1819_s25 = smov 0   ;;  %s1821_s26 = smov 0  }
  0x13   :  { %s1823_s27 = smov 0   ;;  %s1825_s28 = smov 0  }
  0x14 LB: > { %2431 = sst [smem:[#allocation21_spill]] %s1727_s23  ;;  %s38_s29 = sadd.s32 1, %s1739_s26  ;;  %s1747_s28 = sphi %s1825_s28, %s29_s28   ;;  %s1743_s27 = sphi %s1823_s27, %s2472_s27   ;;  %s1739_s26 = sphi %s1821_s26, %s2471_s26   ;;  %s1735_s25 = sphi %s1819_s25, %s2470_s25   ;;  %s1731_s24 = sphi %s1817_s24, %s2475_s24   ;;  %s1727_s23 = sphi %s1815_s23, %s2468_s23   ;;  %s1723_s22 = sphi %s1813_s22, %s2474_s22   ;;  %s1719_s21 = sphi %s1811_s21, %s2473_s21  }
  0x15   : > { %2432 = sst [smem:[#allocation22_spill]] %s1731_s24  ;;  %s41_s30 = sadd.s32 1, %s1743_s27 }
  0x16   : > { %2433 = sst [smem:[#allocation23_spill]] %s1735_s25  ;;  %p39_p0 = scmp.ge.s32.totalorder %s38_s29, 2 }
  0x17   : > { %2434 = sst [smem:[#allocation24_spill]] %s1739_s26  ;;  %s71_s7 = sadd.s32 1, %s1727_s23 }
  0x18   : > { %2435 = sst [smem:[#allocation25_spill]] %s1743_s27  ;;  %p78_p1 = scmp.ne.s32.totalorder %s1727_s23, %s1723_s22 }
  0x19   : > { %p79_p2 = scmp.eq.s32.totalorder %s1747_s28, 0  ;;  %s2477_s29 = smov (%p39_p0, %s38_s29), 0 }
  0x1a   : > { %2436 = sst [smem:[#allocation26_spill]] %s2477_s29  ;;  %s2479_s30 = smov (!%p39_p0, %s41_s30), %s1743_s27 }
  0x1b   : > { %s67_s8 = ssub.s32 %s1739_s26, %s2477_s29  ;;  %p80_p3 = por %p79_p2, %p78_p1 }
  0x1c   : > { %p43_p4 = scmp.ge.s32.totalorder %s2479_s30, 2  ;;  %p1378_p5 = scmp.lt.s32.totalorder %s1747_s28, 4 }
  0x1d   : > { %s1867_s9 = sand.u32 1, %s1727_s23   ;;  %s1215_s15 = sshll.u32 %s1743_s27, 4 }
  0x1e   : > { %s2481_s30 = smov (%p43_p4, %s2479_s30), 0  ;;  %p1871_p6 = pnand %p1378_p5, %p80_p3 }
  0x1f   : > { %2437 = sst [smem:[#allocation27_spill]] %s2481_s30  ;;  %s66_s12 = ssub.s32 %s1743_s27, %s2481_s30 }
  0x20   : > { %s68_s13 = sor.u32 %s67_s8, %s66_s12  ;;  %s1879_s14 = sshll.u32 %s1867_s9, 6 }
  0x21   : > { %p69_p7 = scmp.eq.s32.totalorder %s68_s13, 0  ;;  %s288_s17 = sadd.s32 %s1739_s26, %s1215_s15 }
  0x22   : > { %s283_s18 = scalar_lea.vmem [#allocation9], %s1879_s14  ;;  %s1887_s20 = sshll.u32 %s288_s17, 7 }
  0x23   : > { %s1883_s16 = scalar_select %p69_p7, %s1727_s23, %s71_s7  }
  0x24   : > { %s291_s19 = sshll.u32 %s283_s18, 4  ;;  %s2440_s2 = sld [smem:[#allocation31_spill]]  ;;  %s292_s19 = int_to_ptr.vmem [resolvable:$true] %s291_s19 }
  0x25   : > { %2439 = sst [smem:[#allocation28_spill]] %s1883_s16  ;;  %s2441_s30 = sand.u32 1, %s1747_s28  }
  0x26   : > { %s1895_s8 = scalar_lea.sflag [#allocation10], %s2441_s30  ;;  %p1899_p8 = pneg %p1871_p6 }
  0x27   : > { %s1497_s7 = scalar_lea.vmem %s292_s19, 1024  ;;  %s1749_s13 = smov [#allocation9]  }
  0x28   : > { %p1498_p9 = scmp.ne.s32.totalorder %s292_s19, %s1497_s7  ;;  %s1502_s15 = sshll.u32 %s1749_s13, 4  ;;  %s1503_s15 = int_to_ptr.vmem [resolvable:$false] %s1502_s15 }
  0x29   : > { %s1504_s17 = scalar_lea.vmem %s1503_s15, 2048  ;;  %p1505_p12 = scmp.lt.s32.totalorder %s292_s19, %s1503_s15 }
  0x2a   : > { %s290_s11 = scalar_lea.hbm %s2440_s2, %s1887_s20  ;;  %p1500_p10 = pnand %p1498_p9, %p1899_p8 }
  0x2b   : > { %p1506_p13 = scmp.lt.s32.totalorder %s1504_s17, %s1497_s7 }
  0x2c   : > { %p1501_p11 = pneg %p1500_p10 }
  0x2d   : > { %p1507_p0 = por %p1506_p13, %p1505_p12 }
  0x2f   : > { %p1508_p2 = pnand %p1507_p0, %p1501_p11 }
  0x31   : > { %1511 = shalt.err (!%p1508_p2)
}
  0x32   : > { %s2413_s6 = smov 256   ;;  %s2414_s29 = smov 128  }
  0x33   : > { %s2415_s30 = smov 8   ;;  %s2443_s4 = sld [smem:[#allocation33_spill]] }
  0x34   : > { %1363 = dma.hbm_to_vmem [thread:$0]  (!%p1871_p6), %s290_s11, 1024, %s292_s19, %s1895_s8, %s2413_s6, %s2414_s29, %s2415_s30  }
  0x35   : > { %s325_s15 = scalar_lea.vmem [#allocation12], %s1879_s14  ;;  %s2444_s2 = sand.u32 1, %s1747_s28  }
  0x36   : > { %s333_s17 = sshll.u32 %s325_s15, 4  ;;  %s1918_s16 = scalar_lea.sflag [#allocation13], %s2444_s2  ;;  %s334_s17 = int_to_ptr.vmem [resolvable:$true] %s333_s17 }
  0x37   : > { %s1525_s24 = scalar_lea.vmem %s334_s17, 1024  ;;  %s1753_s25 = smov [#allocation12]  }
  0x38   : > { %p1526_p3 = scmp.ne.s32.totalorder %s334_s17, %s1525_s24  ;;  %s1530_s5 = sshll.u32 %s1753_s25, 4  ;;  %s1531_s5 = int_to_ptr.vmem [resolvable:$false] %s1530_s5 }
  0x39   : > { %s332_s7 = scalar_lea.hbm %s2443_s4, %s1887_s20  ;;  %s1532_s3 = scalar_lea.vmem %s1531_s5, 2048 }
  0x3a   : > { %p1528_p4 = pnand %p1526_p3, %p1899_p8  ;;  %p1533_p7 = scmp.lt.s32.totalorder %s334_s17, %s1531_s5 }
  0x3b   : > { %p1534_p9 = scmp.lt.s32.totalorder %s1532_s3, %s1525_s24 }
  0x3c   : > { %p1529_p5 = pneg %p1528_p4 }
  0x3d   : > { %p1535_p10 = por %p1534_p9, %p1533_p7 }
  0x3f   : > { %p1536_p11 = pnand %p1535_p10, %p1529_p5 }
  0x41   : > { %1539 = shalt.err (!%p1536_p11)
}
  0x42   : > { %1369 = dma.hbm_to_vmem [thread:$0]  (!%p1871_p6), %s332_s7, 1024, %s334_s17, %s1918_s16, %s2413_s6, %s2414_s29, %s2415_s30  }
  0x43   : > { %s1929_s2 = sadd.s32 4294967295, %s1747_s28   ;;  %s1207_s3 = sadd.s32 4294967294, %s1747_s28  }
  0x44   : > { %p84_p12 = scmp.ne.s32.totalorder %s1723_s22, %s1719_s21  ;;  %p2416_p13 = scmp.eq.s32.totalorder %s1929_s2, 0 }
  0x45   : > { %p222_p0 = scmp.eq.s32.totalorder %s1929_s2, 3  ;;  %p228_p2 = scmp.eq.s32.totalorder %s1207_s3, 3 }
  0x46   : > { %p1208_p3 = scmp.ge.s32.totalorder %s1747_s28, 1  ;;  %p1939_p4 = por %p2416_p13, %p84_p12 }
  0x47   : > { %p1946_p5 = por %p222_p0, %p78_p1  ;;  %p1950_p7 = por %p228_p2, %p84_p12 }
  0x48   : > { %s2445_s5 = scalar_select %p1939_p4, 1, 0 }
  0x49   : > { %s2446_s24 = scalar_select %p1946_p5, 1, 0 }
  0x4a   : > { %s2447_s25 = scalar_select %p1950_p7, 1, 0 }
  0x4b   : > { %p235_p9 = scmp.lt.s32.totalorder %s1747_s28, 5  ;;  %s2448_s0 = sld [smem:[#allocation29_spill]] }
  0x4c   : > { %s2420_s7 = sshll.u32 %s1867_s9, 3  ;;  %s1212_s15 = sshll.u32 %s1743_s27, 1 }
  0x4d   : > { %p1958_p10 = pnand %p1208_p3, %p235_p9  ;;  %s1973_s3 = sadd.s32 %s1739_s26, %s1212_s15 }
  0x4e   : > { %s1213_s11 = sshll.u32 %s1973_s3, 7  ;;  %s263_s19 = scalar_lea.vmem [#allocation8], %s2420_s7 }
  0x4f   : > { %s2449_s13 = scalar_select %p1958_p10, 1, 0 }
  0x50   : > { %p1353_p1 = pneg %p1958_p10  ;;  %s272_s6 = sshll.u32 %s263_s19, 4  ;;  %s273_s6 = int_to_ptr.vmem [resolvable:$true] %s272_s6 }
  0x51   : > { %s248_s18 = sshll.u32 %s2448_s0, 4  ;;  %s2451_s1 = sld [smem:[#allocation30_spill]]  ;;  %s249_s18 = int_to_ptr.vmem [resolvable:$true] %s248_s18 }
  0x52   : > { %p1968_p11 = pnand %p1353_p1, %p2416_p13  ;;  %s1540_s4 = scalar_lea.vmem %s249_s18, 128 }
  0x53   : > { %p1541_p12 = scmp.ne.s32.totalorder %s249_s18, %s1540_s4  ;;  %p1548_p9 = scmp.lt.s32.totalorder %s249_s18, %s249_s18 }
  0x54   : > { %p1542_p0 = pneg %p1968_p11  ;;  %p1549_p1 = scmp.lt.s32.totalorder %s1540_s4, %s1540_s4 }
  0x56   : > { %p1543_p2 = pnand %p1542_p0, %p1541_p12  ;;  %p1550_p13 = por %p1549_p1, %p1548_p9 }
  0x57   : > { %s1983_s0 = scalar_lea.hbm %s2451_s1, %s1213_s11 }
  0x58   : > { %p1544_p3 = pneg %p1543_p2 }
  0x5a   : > { %p1551_p7 = pnand %p1550_p13, %p1544_p3 }
  0x5c   : > { %1554 = shalt.err (!%p1551_p7)
}
  0x5d   : > { %s1754_s15 = smov [#allocation4]   ;;  %s260_s29 = scalar_lea.sflag [#allocation5], %s1867_s9 }
  0x5e   : > { %1356 = dma.vmem_to_smem (!%p1968_p11), %s249_s18, 128, %s1754_s15, [#allocation7]  }
  0x5f   : > { %s1568_s30 = scalar_lea.vmem %s273_s6, 128  ;;  %s1755_s19 = smov [#allocation8]  }
  0x60   : > { %p1569_p5 = scmp.ne.s32.totalorder %s273_s6, %s1568_s30  ;;  %s1573_s7 = sshll.u32 %s1755_s19, 4  ;;  %s1574_s7 = int_to_ptr.vmem [resolvable:$false] %s1573_s7 }
  0x61   : > { %s1575_s4 = scalar_lea.vmem %s1574_s7, 256  ;;  %p1576_p12 = scmp.lt.s32.totalorder %s273_s6, %s1574_s7 }
  0x62   : > { %p1571_p4 = pnand %p1569_p5, %p1899_p8  ;;  %p1577_p13 = scmp.lt.s32.totalorder %s1575_s4, %s1568_s30 }
  0x64   : > { %p1572_p10 = pneg %p1571_p4  ;;  %p1578_p7 = por %p1577_p13, %p1576_p12 }
  0x66   : > { %p1579_p0 = pnand %p1578_p7, %p1572_p10 }
  0x68   : > { %1582 = shalt.err (!%p1579_p0)
}
  0x69   : > { %1360 = dma.hbm_to_vmem [thread:$0]  (!%p1871_p6), %s1983_s0, 128, %s273_s6, %s260_s29  }
  0x6a   : > { %s2452_s15 = sld [smem:[#allocation32_spill]]  ;;  %s2453_s19 = sshll.u32 %s1867_s9, 3 }
  0x6b   : > { %s305_s27 = scalar_lea.vmem [#allocation11], %s2453_s19  ;;  %s1756_s30 = smov [#allocation11]  }
  0x6c   : > { %s314_s26 = sshll.u32 %s305_s27, 4  ;;  %s1601_s4 = sshll.u32 %s1756_s30, 4  ;;  %s315_s26 = int_to_ptr.vmem [resolvable:$true] %s314_s26  ;;  %s1602_s4 = int_to_ptr.vmem [resolvable:$false] %s1601_s4 }
  0x6d   : > { %s1596_s7 = scalar_lea.vmem %s315_s26, 128  ;;  %s1603_s23 = scalar_lea.vmem %s1602_s4, 256 }
  0x6e   : > { %p1597_p4 = scmp.ne.s32.totalorder %s315_s26, %s1596_s7  ;;  %p1604_p11 = scmp.lt.s32.totalorder %s315_s26, %s1602_s4 }
  0x6f   : > { %p1605_p2 = scmp.lt.s32.totalorder %s1603_s23, %s1596_s7 }
  0x70   : > { %s312_s1 = scalar_lea.hbm %s2452_s15, %s1213_s11  ;;  %p1599_p5 = pnand %p1597_p4, %p1899_p8 }
  0x71   : > { %p1606_p3 = por %p1605_p2, %p1604_p11 }
  0x72   : > { %p1600_p10 = pneg %p1599_p5 }
  0x74   : > { %p1607_p9 = pnand %p1606_p3, %p1600_p10 }
  0x76   : > { %1610 = shalt.err (!%p1607_p9)
}
  0x77   : > { %1366 = dma.hbm_to_vmem [thread:$0]  (!%p1871_p6), %s312_s1, 128, %s315_s26, %s1895_s8  }
  0x78   : > { %s2454_s9 = sld [smem:[#allocation34_spill]]  ;;  %s347_s3 = scalar_lea.vmem [#allocation14], %s1879_s14 }
  0x79   : > { %s355_s11 = sshll.u32 %s347_s3, 4  ;;  %s1757_s23 = smov [#allocation14]   ;;  %s356_s11 = int_to_ptr.vmem [resolvable:$true] %s355_s11 }
  0x7a   : > { %s1624_s29 = scalar_lea.vmem %s356_s11, 1024  ;;  %s1629_s18 = sshll.u32 %s1757_s23, 4  ;;  %s1630_s18 = int_to_ptr.vmem [resolvable:$false] %s1629_s18 }
  0x7b   : > { %p1625_p1 = scmp.ne.s32.totalorder %s356_s11, %s1624_s29  ;;  %s1631_s17 = scalar_lea.vmem %s1630_s18, 2048 }
  0x7c   : > { %p1632_p7 = scmp.lt.s32.totalorder %s356_s11, %s1630_s18  ;;  %p1633_p0 = scmp.lt.s32.totalorder %s1631_s17, %s1624_s29 }
  0x7d   : > { %p1627_p12 = pnand %p1625_p1, %p1899_p8 }
  0x7e   : > { %s354_s6 = scalar_lea.hbm %s2454_s9, %s1887_s20  ;;  %p1634_p4 = por %p1633_p0, %p1632_p7 }
  0x7f   : > { %p1628_p13 = pneg %p1627_p12 }
  0x81   : > { %p1635_p5 = pnand %p1634_p4, %p1628_p13 }
  0x83   : > { %1638 = shalt.err (!%p1635_p5)
}
  0x84   : > { %s2455_s1 = smov 8   ;;  %s2456_s26 = smov 128  }
  0x85   : > { %s2457_s14 = smov 256   ;;  %p2458_p10 = scmp.ne.s32.totalorder %s2449_s13, 0 }
  0x86   : > { %1372 = dma.hbm_to_vmem [thread:$0]  (!%p1871_p6), %s354_s6, 1024, %s356_s11, %s1918_s16, %s2457_s14, %s2456_s26, %s2455_s1  }
  0x87   : > { %367 = sbr.rel (%p2458_p10) target bundleno = 533 (0x215), region = 44  ;;  %p2459_p8 = scmp.eq.s32.totalorder (!%p2458_p10), %s1929_s2, 0 }
  0x8c   : > { %1698 = dma.done.wait (%p2459_p8), [#allocation7], 128   ;;  %p2460_p11 = pmov %p2459_p8 }
  0x8d   : > { %s2027_s20 = sand.u32 1, %s1723_s22   ;;  %p2461_p6 = scmp.ne.s32.totalorder %s2445_s5, 0 }
  0x8e   : > { %1700 = vsyncadd (%p2460_p11), [#allocation7], 4294967168  ;;  %s1228_s10 = sshll.u32 %s2027_s20, 3  ;;  %s374_s8 = scalar_lea.sflag [#allocation5], %s2027_s20 }
  0x8f   : > { %s2031_s12 = scalar_lea.vmem [#allocation8], %s1228_s10 }
  0x90   : > { %1702 = dma.done.wait (%p2461_p6), %s374_s8, 128  }
  0x91   : > { %1704 = vsyncadd (%p2461_p6), %s374_s8, 4294967168  ;;  %s382_s16 = sand.u32 1, %s1929_s2   ;;  %s2039_s13 = sshll.u32 %s2027_s20, 6 }
  0x92   : > { %s383_s15 = scalar_lea.sflag [#allocation10], %s382_s16  ;;  %s2042_s19 = scalar_lea.vmem [#allocation9], %s2039_s13 }
  0x93   : > { %1706 = dma.done.wait (%p2461_p6), %s383_s15, 1152  }
  0x94   : > { %1708 = vsyncadd (%p2461_p6), %s383_s15, 4294966144  ;;  %s2048_s7 = scalar_lea.vmem [#allocation11], %s1228_s10  ;;  %s401_s30 = scalar_lea.sflag [#allocation13], %s382_s16 }
  0x95   : > { %s404_s4 = scalar_lea.vmem [#allocation12], %s2039_s13 }
  0x96   : > { %1710 = dma.done.wait (%p2461_p6), %s401_s30, 2048  }
  0x97   : > { %1712 = vsyncadd (%p2461_p6), %s401_s30, 4294965248  ;;  %s413_s2 = scalar_lea.vmem [#allocation14], %s2039_s13 }
  0x98   : > { %418 = sfence }
  0x99   : > { %v463_v0 = vld [vmem:[%s404_s4] sm:$0xff]  ;;  %v464_v1 = vld [vmem:[%s404_s4 + $0x8] sm:$0xff]  ;;  %v465_v2 = vld [vmem:[%s404_s4 + $0x10] sm:$0xff]  ;;  %s2056_s0 = sld [smem:[#allocation4 + $0x80]]  ;;  %vm487_vm0 = vcmask 130048   ;;  %vm496_vm1 = vcmask 244736  }
  0x9a   : > { %v466_v3 = vld [vmem:[%s404_s4 + $0x18] sm:$0xff]  ;;  %v467_v4 = vld [vmem:[%s404_s4 + $0x20] sm:$0xff]  ;;  %v468_v5 = vld [vmem:[%s404_s4 + $0x28] sm:$0xff]  ;;  %s2058_s27 = sld [smem:[#allocation4 + $0x81]]  ;;  %v1758_v24 = vmov 0.0   ;;  %vm602_vm2 = vcmask 146448  }
  0x9b   : > { %v469_v6 = vld [vmem:[%s404_s4 + $0x30] sm:$0xff]  ;;  %v470_v7 = vld [vmem:[%s404_s4 + $0x38] sm:$0xff]  ;;  %v471_v8 = vld [vmem:[%s413_s2] sm:$0xff]  ;;  %s2060_s9 = sld [smem:[#allocation4 + $0x82]]  ;;  %497 = vst.msk [vmem:[#allocation3] sm:$0xff] %vm496_vm1, %v1758_v24  ;;  %vm655_vm3 = vcmask 162848  }
  0x9c   : > { %v472_v9 = vld [vmem:[%s413_s2 + $0x8] sm:$0xff]  ;;  %v473_v10 = vld [vmem:[%s413_s2 + $0x10] sm:$0xff]  ;;  %v474_v11 = vld [vmem:[%s413_s2 + $0x18] sm:$0xff]  ;;  %v479_v12 = vmul.f32 %v471_v8, %v463_v0  ;;  %s2062_s5 = sld [smem:[#allocation4 + $0x83]]  ;;  %vm708_vm4 = vcmask 179248   ;;  %vm761_vm5 = vcmask 195648  }
  0x9d   : > { %v475_v13 = vld [vmem:[%s413_s2 + $0x20] sm:$0xff]  ;;  %v476_v14 = vld [vmem:[%s413_s2 + $0x28] sm:$0xff]  ;;  %v477_v15 = vld [vmem:[%s413_s2 + $0x30] sm:$0xff]  ;;  %v480_v16 = vmul.f32 %v472_v9, %v464_v1  ;;  %v481_v17 = vmul.f32 %v473_v10, %v465_v2  ;;  %v482_v18 = vmul.f32 %v474_v11, %v466_v3  ;;  %s2064_s6 = sld [smem:[#allocation4 + $0x84]]  ;;  %vm814_vm6 = vcmask 212048   ;;  %p2465_p3 = scmp.ne.s32.totalorder %s2446_s24, 0 }
  0x9e   : > { %v478_v19 = vld [vmem:[%s413_s2 + $0x38] sm:$0xff]  ;;  %v483_v20 = vmul.f32 %v475_v13, %v467_v4  ;;  %v484_v21 = vmul.f32 %v476_v14, %v468_v5  ;;  %v485_v22 = vmul.f32 %v477_v15, %v469_v6  ;;  %488 = vst.msk [vmem:[#allocation2] sm:$0xff] %vm487_vm0, %v479_v12  ;;  %s2067_s3 = sld [smem:[#allocation4 + $0x85]]  ;;  %vm867_vm7 = vcmask 228448  }
  0x9f   : > { %v486_v23 = vmul.f32 %v478_v19, %v470_v7  ;;  %489 = vst.msk [vmem:[#allocation2 + $0x8] sm:$0xff] %vm487_vm0, %v480_v16  ;;  %490 = vst.msk [vmem:[#allocation2 + $0x10] sm:$0xff] %vm487_vm0, %v481_v17  ;;  %s2072_s11 = sld [smem:[#allocation4 + $0x86]]  ;;  %v553_v25 = vstv %s2056_s0  ;;  %vm920_vm8 = vcmask 244848  }
  0xa0   : > { %491 = vst.msk [vmem:[#allocation2 + $0x18] sm:$0xff] %vm487_vm0, %v482_v18  ;;  %492 = vst.msk [vmem:[#allocation2 + $0x20] sm:$0xff] %vm487_vm0, %v483_v20  ;;  %s2077_s29 = sld [smem:[#allocation4 + $0x87]]  ;;  %v557_v26 = vstv %s2058_s27 }
  0xa1   : > { %493 = vst.msk [vmem:[#allocation2 + $0x28] sm:$0xff] %vm487_vm0, %v484_v21  ;;  %494 = vst.msk [vmem:[#allocation2 + $0x30] sm:$0xff] %vm487_vm0, %v485_v22  ;;  %s1251_s23 = sld [smem:[#allocation4 + $0x100]]  ;;  %v562_v27 = vstv %s2060_s9 }
  0xa2   : > { %495 = vst.msk [vmem:[#allocation2 + $0x38] sm:$0xff] %vm487_vm0, %v486_v23  ;;  %s1252_s18 = sld [smem:[#allocation4 + $0x101]]  ;;  %v567_v33 = vstv %s2062_s5 }
  0xa3   : > { %s1253_s17 = sld [smem:[#allocation4 + $0x102]]  ;;  %v572_v38 = vstv %s2064_s6 }
  0xa4   : > { %s2083_s1 = sld [smem:[#allocation4 + $0x103]]  ;;  %v577_v45 = vstv %s2067_s3 }
  0xa5   : > { %v2085_v28 = vld [vmem:[#allocation2] sm:$0xff]  ;;  %s2087_s26 = sld [smem:[#allocation4 + $0x104]]  ;;  %v582_v52 = vstv %s2072_s11 }
  0xa6   : > { %v554_v29 = vmul.f32 %v553_v25, %v2085_v28  ;;  %v2090_v30 = vld [vmem:[#allocation2 + $0x8] sm:$0xff]  ;;  %v2092_v31 = vld [vmem:[#allocation2 + $0x10] sm:$0xff]  ;;  %s2097_s14 = sld [smem:[#allocation4 + $0x105]]  ;;  %v587_v55 = vstv %s2077_s29 }
  0xa7   : > { %v2094_v32 = vld [vmem:[#allocation2 + $0x18] sm:$0xff]  ;;  %v558_v34 = vmul.f32 %v557_v26, %v2090_v30  ;;  %v563_v35 = vmul.f32 %v562_v27, %v2092_v31  ;;  %v606_v36 = vstv %s1251_s23  ;;  %s2101_s10 = sld [smem:[#allocation4 + $0x106]]  ;;  %v2103_v37 = vld [vmem:[#allocation2 + $0x20] sm:$0xff] }
  0xa8   : > { %v607_v39 = vmul.f32 %v606_v36, %v2085_v28  ;;  %s2107_s8 = sld [smem:[#allocation4 + $0x107]]  ;;  %v568_v41 = vmul.f32 %v567_v33, %v2094_v32  ;;  %v610_v42 = vstv %s1252_s18  ;;  %v2112_v44 = vld [vmem:[#allocation2 + $0x28] sm:$0xff]  ;;  %v573_v50 = vmul.f32 %v572_v38, %v2103_v37  ;;  %v2121_v51 = vld [vmem:[#allocation2 + $0x30] sm:$0xff] }
  0xa9   : > { %v559_v40 = vadd.f32 %v558_v34, %v554_v29  ;;  %v615_v43 = vstv %s1253_s17  ;;  %s2110_s16 = sld [smem:[#allocation4 + $0x180]]  ;;  %v611_v46 = vmul.f32 %v610_v42, %v2090_v30  ;;  %v2127_v54 = vld [vmem:[#allocation2 + $0x38] sm:$0xff]  ;;  %v578_v59 = vmul.f32 %v577_v45, %v2112_v44 }
  0xaa   : > { %v616_v47 = vmul.f32 %v615_v43, %v2092_v31  ;;  %v620_v48 = vstv %s2083_s1  ;;  %s2118_s15 = sld [smem:[#allocation4 + $0x181]]  ;;  %v583_v61 = vmul.f32 %v582_v52, %v2121_v51  ;;  %v588_v1 = vmul.f32 %v587_v55, %v2127_v54 }
  0xab   : > { %v564_v49 = vadd.f32 %v563_v35, %v559_v40  ;;  %v625_v53 = vstv %s2087_s26  ;;  %s2125_s30 = sld [smem:[#allocation4 + $0x182]]  ;;  %v612_v56 = vadd.f32 %v611_v46, %v607_v39  ;;  %v621_v57 = vmul.f32 %v620_v48, %v2094_v32 }
  0xac   : > { %s2131_s4 = sld [smem:[#allocation4 + $0x183]]  ;;  %v630_v60 = vstv %s2097_s14  ;;  %v626_v63 = vmul.f32 %v625_v53, %v2103_v37 }
  0xad   : > { %v569_v58 = vadd.f32 %v568_v41, %v564_v49  ;;  %s2135_s2 = sld [smem:[#allocation4 + $0x184]]  ;;  %v617_v62 = vadd.f32 %v616_v47, %v612_v56  ;;  %v635_v2 = vstv %s2101_s10  ;;  %v631_v5 = vmul.f32 %v630_v60, %v2112_v44 }
  0xae   : > { %s2139_s0 = sld [smem:[#allocation4 + $0x185]]  ;;  %v640_v9 = vstv %s2107_s8  ;;  %v636_v13 = vmul.f32 %v635_v2, %v2121_v51 }
  0xaf   : > { %v574_v0 = vadd.f32 %v573_v50, %v569_v58  ;;  %v659_v3 = vstv %s2110_s16  ;;  %s2144_s27 = sld [smem:[#allocation4 + $0x186]]  ;;  %v622_v4 = vadd.f32 %v621_v57, %v617_v62  ;;  %v641_v21 = vmul.f32 %v640_v9, %v2127_v54 }
  0xb0   : > { %v660_v6 = vmul.f32 %v659_v3, %v2085_v28  ;;  %v663_v7 = vstv %s2118_s15  ;;  %s2149_s9 = sld [smem:[#allocation4 + $0x187]] }
  0xb1   : > { %v579_v8 = vadd.f32 %v578_v59, %v574_v0  ;;  %v664_v10 = vmul.f32 %v663_v7, %v2090_v30  ;;  %v668_v11 = vstv %s2125_s30  ;;  %s1271_s5 = sld [smem:[#allocation4 + $0x200]]  ;;  %v627_v12 = vadd.f32 %v626_v63, %v622_v4 }
  0xb2   : > { %v669_v14 = vmul.f32 %v668_v11, %v2092_v31  ;;  %v673_v15 = vstv %s2131_s4  ;;  %s1272_s6 = sld [smem:[#allocation4 + $0x201]] }
  0xb3   : > { %v584_v16 = vadd.f32 %v583_v61, %v579_v8  ;;  %v665_v17 = vadd.f32 %v664_v10, %v660_v6  ;;  %v674_v18 = vmul.f32 %v673_v15, %v2094_v32  ;;  %v678_v19 = vstv %s2135_s2  ;;  %s1273_s3 = sld [smem:[#allocation4 + $0x202]] }
  0xb4   : > { %v632_v20 = vadd.f32 %v631_v5, %v627_v12  ;;  %v683_v22 = vstv %s2139_s0  ;;  %s1274_s11 = sld [smem:[#allocation4 + $0x203]]  ;;  %v679_v25 = vmul.f32 %v678_v19, %v2103_v37 }
  0xb5   : > { %v589_v23 = vadd.f32 %v588_v1, %v584_v16  ;;  %v670_v24 = vadd.f32 %v669_v14, %v665_v17  ;;  %s2162_s29 = sld [smem:[#allocation4 + $0x204]]  ;;  %v684_v27 = vmul.f32 %v683_v22, %v2112_v44  ;;  %v688_v29 = vstv %s2144_s27 }
  0xb6   : > { %v637_v26 = vadd.f32 %v636_v13, %v632_v20  ;;  %s2166_s23 = sld [smem:[#allocation4 + $0x205]]  ;;  %v693_v34 = vstv %s2149_s9  ;;  %v689_v41 = vmul.f32 %v688_v29, %v2121_v51  ;;  %s1759_s9 = smov 2  }
  0xb7   : > { %1466 = vtanh.f32 %v589_v23  ;;  %v675_v33 = vadd.f32 %v674_v18, %v670_v24  ;;  %v712_v35 = vstv %s1271_s5  ;;  %s2169_s18 = sld [smem:[#allocation4 + $0x206]]  ;;  %v694_v45 = vmul.f32 %v693_v34, %v2127_v54 }
  0xb8   : > { %v642_v36 = vadd.f32 %v641_v21, %v637_v26  ;;  %v713_v38 = vmul.f32 %v712_v35, %v2085_v28  ;;  %v716_v39 = vstv %s1272_s6  ;;  %s2172_s17 = sld [smem:[#allocation4 + $0x207]] }
  0xb9   : > { %v680_v40 = vadd.f32 %v679_v25, %v675_v33  ;;  %v717_v42 = vmul.f32 %v716_v39, %v2090_v30  ;;  %v721_v43 = vstv %s1273_s3  ;;  %s1281_s1 = sld [smem:[#allocation4 + $0x280]] }
  0xba   : > { %1468 = vtanh.f32 %v642_v36  ;;  %v722_v46 = vmul.f32 %v721_v43, %v2092_v31  ;;  %v726_v47 = vstv %s1274_s11  ;;  %s1282_s26 = sld [smem:[#allocation4 + $0x281]] }
  0xbb   : > { %v685_v48 = vadd.f32 %v684_v27, %v680_v40  ;;  %v718_v49 = vadd.f32 %v717_v42, %v713_v38  ;;  %v727_v50 = vmul.f32 %v726_v47, %v2094_v32  ;;  %v731_v52 = vstv %s2162_s29  ;;  %s1283_s14 = sld [smem:[#allocation4 + $0x282]]  ;;  %s1760_s29 = smov 4  }
  0xbc   : > { %v736_v53 = vstv %s2166_s23  ;;  %s1284_s10 = sld [smem:[#allocation4 + $0x283]]  ;;  %v732_v57 = vmul.f32 %v731_v52, %v2103_v37 }
  0xbd   : > { %v690_v55 = vadd.f32 %v689_v41, %v685_v48  ;;  %v723_v56 = vadd.f32 %v722_v46, %v718_v49  ;;  %v741_v58 = vstv %s2169_s18  ;;  %s2183_s8 = sld [smem:[#allocation4 + $0x284]]  ;;  %v737_v59 = vmul.f32 %v736_v53, %v2112_v44 }
  0xbe   : > { %s2186_s16 = sld [smem:[#allocation4 + $0x285]]  ;;  %v746_v62 = vstv %s2172_s17  ;;  %v742_v0 = vmul.f32 %v741_v58, %v2121_v51 }
  0xbf   : > { %v695_v60 = vadd.f32 %v694_v45, %v690_v55  ;;  %v728_v61 = vadd.f32 %v727_v50, %v723_v56  ;;  %v765_v63 = vstv %s1281_s1  ;;  %s2189_s15 = sld [smem:[#allocation4 + $0x286]]  ;;  %v747_v6 = vmul.f32 %v746_v62, %v2127_v54 }
  0xc0   : > { %v766_v1 = vmul.f32 %v765_v63, %v2085_v28  ;;  %v769_v2 = vstv %s1282_s26  ;;  %s2193_s30 = sld [smem:[#allocation4 + $0x287]] }
  0xc1   : > { %1470 = vtanh.f32 %v695_v60  ;;  %v733_v3 = vadd.f32 %v732_v57, %v728_v61  ;;  %v770_v4 = vmul.f32 %v769_v2, %v2090_v30  ;;  %v774_v5 = vstv %s1283_s14  ;;  %s1291_s4 = sld [smem:[#allocation4 + $0x300]] }
  0xc2   : > { %v775_v7 = vmul.f32 %v774_v5, %v2092_v31  ;;  %v779_v8 = vstv %s1284_s10  ;;  %s2198_s2 = sld [smem:[#allocation4 + $0x301]]  ;;  %s1761_s10 = smov 6  }
  0xc3   : > { %v738_v9 = vadd.f32 %v737_v59, %v733_v3  ;;  %v771_v10 = vadd.f32 %v770_v4, %v766_v1  ;;  %v780_v11 = vmul.f32 %v779_v8, %v2094_v32  ;;  %v784_v12 = vstv %s2183_s8  ;;  %s2202_s0 = sld [smem:[#allocation4 + $0x302]] }
  0xc4   : > { %v2204_v13 = vpop.eup %1466  ;;  %v789_v14 = vstv %s2186_s16  ;;  %s2207_s27 = sld [smem:[#allocation4 + $0x303]]  ;;  %v785_v17 = vmul.f32 %v784_v12, %v2103_v37 }
  0xc5   : > { %597 = vrot.lane.b32.xlu0 %v2204_v13, %s1759_s9  ;;  %v743_v15 = vadd.f32 %v742_v0, %v738_v9  ;;  %v776_v16 = vadd.f32 %v775_v7, %v771_v10  ;;  %v794_v18 = vstv %s2189_s15  ;;  %s2212_s5 = sld [smem:[#allocation4 + $0x304]]  ;;  %v790_v19 = vmul.f32 %v789_v14, %v2112_v44  ;;  %s1762_s9 = smov 8  }
  0xc6   : > { %s2215_s6 = sld [smem:[#allocation4 + $0x305]]  ;;  %v799_v23 = vstv %s2193_s30  ;;  %v795_v25 = vmul.f32 %v794_v18, %v2121_v51 }
  0xc7   : > { %v2217_v20 = vpop.eup %1468  ;;  %v748_v21 = vadd.f32 %v747_v6, %v743_v15  ;;  %v781_v22 = vadd.f32 %v780_v11, %v776_v16  ;;  %v818_v24 = vstv %s1291_s4  ;;  %s2220_s3 = sld [smem:[#allocation4 + $0x306]]  ;;  %v800_v35 = vmul.f32 %v799_v23, %v2127_v54 }
  0xc8   : > { %v819_v26 = vmul.f32 %v818_v24, %v2085_v28  ;;  %v822_v27 = vstv %s2198_s2  ;;  %s2225_s11 = sld [smem:[#allocation4 + $0x307]] }
  0xc9   : > { %650 = vrot.lane.b32.xlu0 %v2217_v20, %s1760_s29  ;;  %1472 = vtanh.f32 %v748_v21  ;;  %v786_v29 = vadd.f32 %v785_v17, %v781_v22  ;;  %v823_v33 = vmul.f32 %v822_v27, %v2090_v30  ;;  %v827_v34 = vstv %s2202_s0  ;;  %s1301_s23 = sld [smem:[#allocation4 + $0x380]]  ;;  %s1765_s29 = smov 14  }
  0xca   : > { %v828_v36 = vmul.f32 %v827_v34, %v2092_v31  ;;  %v832_v38 = vstv %s2207_s27  ;;  %s1302_s18 = sld [smem:[#allocation4 + $0x381]] }
  0xcb   : > { %v791_v39 = vadd.f32 %v790_v19, %v786_v29  ;;  %v824_v40 = vadd.f32 %v823_v33, %v819_v26  ;;  %v833_v41 = vmul.f32 %v832_v38, %v2094_v32  ;;  %v837_v42 = vstv %s2212_s5  ;;  %s1303_s17 = sld [smem:[#allocation4 + $0x382]] }
  0xcc   : > { %v842_v43 = vstv %s2215_s6  ;;  %s2236_s1 = sld [smem:[#allocation4 + $0x383]]  ;;  %v838_v47 = vmul.f32 %v837_v42, %v2103_v37 }
  0xcd   : > { %v796_v45 = vadd.f32 %v795_v25, %v791_v39  ;;  %v829_v46 = vadd.f32 %v828_v36, %v824_v40  ;;  %v847_v48 = vstv %s2220_s3  ;;  %s2240_s26 = sld [smem:[#allocation4 + $0x384]]  ;;  %v843_v50 = vmul.f32 %v842_v43, %v2112_v44  ;;  %s1763_s3 = smov 10  }
  0xce   : > { %v2242_v49 = vpop.eup %1470  ;;  %s2245_s14 = sld [smem:[#allocation4 + $0x385]]  ;;  %v852_v55 = vstv %s2225_s11  ;;  %v848_v57 = vmul.f32 %v847_v48, %v2121_v51  ;;  %s1764_s11 = smov 12  }
  0xcf   : > { %703 = vrot.lane.b32.xlu1 %v2242_v49, %s1761_s10  ;;  %v801_v52 = vadd.f32 %v800_v35, %v796_v45  ;;  %v834_v53 = vadd.f32 %v833_v41, %v829_v46  ;;  %v871_v56 = vstv %s1301_s23  ;;  %s2249_s8 = sld [smem:[#allocation4 + $0x386]]  ;;  %v853_v63 = vmul.f32 %v852_v55, %v2127_v54  ;;  %v546_v55 = vld [vmem:[#allocation3] sm:$0xff]  ;;  %s2286_s23 = scalar_lea.vmem [#allocation15], %s2039_s13 }
  0xd0   : > { %v872_v58 = vmul.f32 %v871_v56, %v2085_v28  ;;  %v875_v59 = vstv %s1302_s18  ;;  %s2253_s16 = sld [smem:[#allocation4 + $0x387]]  ;;  %1259 = vst.msk [vmem:[%s2286_s23 + $0x10] sm:$0xff] %vm487_vm0, %v2217_v20  ;;  %1249 = vst.msk [vmem:[%s2286_s23 + $0x8] sm:$0xff] %vm487_vm0, %v2204_v13  ;;  %v1260_v13 = vld [vmem:[%s2042_s19 + $0x10] sm:$0xff]  ;;  %s1766_s13 = smov 124  }
  0xd1   : > { %1474 = vtanh.f32 %v801_v52  ;;  %v839_v60 = vadd.f32 %v838_v47, %v834_v53  ;;  %v876_v61 = vmul.f32 %v875_v59, %v2090_v30  ;;  %v880_v62 = vstv %s1303_s17  ;;  %s498_s15 = sld [smem:[#allocation4]]  ;;  %1269 = vst.msk [vmem:[%s2286_s23 + $0x18] sm:$0xff] %vm487_vm0, %v2242_v49  ;;  %s1770_s18 = smov 116  }
  0xd2   : > { %v881_v0 = vmul.f32 %v880_v62, %v2092_v31  ;;  %v885_v1 = vstv %s2236_s1  ;;  %s1234_s30 = sld [smem:[#allocation4 + $0x1]]  ;;  %s1771_s1 = smov 118  }
  0xd3   : > { %v844_v2 = vadd.f32 %v843_v50, %v839_v60  ;;  %v877_v3 = vadd.f32 %v876_v61, %v872_v58  ;;  %v886_v4 = vmul.f32 %v885_v1, %v2094_v32  ;;  %v890_v5 = vstv %s2240_s26  ;;  %s1235_s4 = sld [smem:[#allocation4 + $0x2]]  ;;  %s1772_s26 = smov 114  }
  0xd4   : > { %v895_v6 = vstv %s2245_s14  ;;  %s1236_s2 = sld [smem:[#allocation4 + $0x3]]  ;;  %v891_v9 = vmul.f32 %v890_v5, %v2103_v37 }
  0xd5   : > { %v849_v7 = vadd.f32 %v848_v57, %v844_v2  ;;  %v882_v8 = vadd.f32 %v881_v0, %v877_v3  ;;  %v900_v10 = vstv %s2249_s8  ;;  %s1237_s0 = sld [smem:[#allocation4 + $0x4]]  ;;  %v896_v12 = vmul.f32 %v895_v6, %v2112_v44 }
  0xd6   : > { %v1473_v11 = vpop.eup %1472  ;;  %s2265_s27 = sld [smem:[#allocation4 + $0x5]]  ;;  %v905_v16 = vstv %s2253_s16  ;;  %v901_v18 = vmul.f32 %v900_v10, %v2121_v51 }
  0xd7   : > { %756 = vrot.lane.b32.xlu1 %v1473_v11, %s1762_s9  ;;  %v854_v14 = vadd.f32 %v853_v63, %v849_v7  ;;  %v887_v15 = vadd.f32 %v886_v4, %v882_v8  ;;  %v500_v17 = vstv %s498_s15  ;;  %s1239_s5 = sld [smem:[#allocation4 + $0x6]]  ;;  %v906_v25 = vmul.f32 %v905_v16, %v2127_v54  ;;  %1279 = vst.msk [vmem:[%s2286_s23 + $0x20] sm:$0xff] %vm487_vm0, %v1473_v11  ;;  %v1270_v63 = vld [vmem:[%s2042_s19 + $0x18] sm:$0xff]  ;;  %s1012_s15 = sshll.u32 %s2286_s23, 4  ;;  %s2347_s15 = int_to_ptr.vmem [resolvable:$true] %s1012_s15 }
  0xd8   : > { %v505_v19 = vstv %s1234_s30  ;;  %s1240_s6 = sld [smem:[#allocation4 + $0x7]]  ;;  %v501_v21 = vmul.f32 %v2085_v28, %v500_v17  ;;  %v1280_v4 = vld [vmem:[%s2042_s19 + $0x20] sm:$0xff] }
  0xd9   : > { %1476 = vtanh.f32 %v854_v14  ;;  %v892_v22 = vadd.f32 %v891_v9, %v887_v15  ;;  %v506_v23 = vmul.f32 %v2090_v30, %v505_v19  ;;  %v511_v24 = vstv %s1235_s4  ;;  %v1290_v9 = vld [vmem:[%s2042_s19 + $0x28] sm:$0xff]  ;;  %v1300_v15 = vld [vmem:[%s2042_s19 + $0x30] sm:$0xff]  ;;  %s2462_s17 = sld [smem:[#allocation23_spill]] }
  0xda   : > { %v512_v26 = vmul.f32 %v2092_v31, %v511_v24  ;;  %v517_v27 = vstv %s1236_s2  ;;  %v922_v19 = vld [vmem:[%s2048_s7] sm:$0xff]  ;;  %s1769_s7 = smov 122   ;;  %s2463_s14 = sld [smem:[#allocation22_spill]] }
  0xdb   : > { %v897_v29 = vadd.f32 %v896_v12, %v892_v22  ;;  %v518_v33 = vmul.f32 %v2094_v32, %v517_v27  ;;  %v523_v34 = vstv %s1237_s0  ;;  %v507_v35 = vadd.f32 %v506_v23, %v501_v21  ;;  %v1310_v23 = vld [vmem:[%s2042_s19 + $0x38] sm:$0xff]  ;;  %s2464_s2 = sld [smem:[#allocation35_spill]] }
  0xdc   : > { %v529_v36 = vstv %s2265_s27  ;;  %v524_v39 = vmul.f32 %v2103_v37, %v523_v34  ;;  %v923_v22 = vadd.f32 1e-07, %v922_v19  ;;  %s998_s27 = scalar_lea.sflag [#allocation6], %s2027_s20 }
  0xdd   : > { %v902_v38 = vadd.f32 %v901_v18, %v897_v29  ;;  %v513_v28 = vadd.f32 %v512_v26, %v507_v35  ;;  %v535_v41 = vstv %s1239_s5  ;;  %v530_v42 = vmul.f32 %v2112_v44, %v529_v36  ;;  %v2281_v44 = vld [vmem:[%s2042_s19] sm:$0xff]  ;;  %v925_v29 = vld [vmem:[%s2031_s12] sm:$0xff]  ;;  %s1768_s12 = smov 120   ;;  %s1639_s5 = scalar_lea.vmem %s2347_s15, 1024 }
  0xde   : > { %v1475_v40 = vpop.eup %1474  ;;  %v541_v31 = vstv %s1240_s6  ;;  %v536_v32 = vmul.f32 %v2121_v51, %v535_v41  ;;  %p1640_p2 = scmp.ne.s32.totalorder %s2347_s15, %s1639_s5  ;;  %s1773_s6 = smov [#allocation15]  }
  0xdf   : > { %809 = vrot.lane.b32.xlu0 %v1475_v40, %s1763_s3  ;;  %v907_v30 = vadd.f32 %v906_v25, %v902_v38  ;;  %v519_v43 = vadd.f32 %v518_v33, %v513_v28  ;;  %v542_v46 = vmul.f32 %v2127_v54, %v541_v31  ;;  %1289 = vst.msk [vmem:[%s2286_s23 + $0x28] sm:$0xff] %vm487_vm0, %v1475_v40  ;;  %v1250_v54 = vld [vmem:[%s2042_s19 + $0x8] sm:$0xff]  ;;  %s1767_s19 = smov 126   ;;  %s1333_s10 = sshll.u32 %s2462_s17, 4 }
  0xe0   : > { %s1009_s8 = sadd.s32 %s2463_s14, %s1333_s10  ;;  %p1641_p9 = pnand %p1640_p2, %p2465_p3 }
  0xe1   : > { %1478 = vtanh.f32 %v907_v30  ;;  %v525_v45 = vadd.f32 %v524_v39, %v519_v43  ;;  %s1334_s16 = sshll.u32 %s1009_s8, 7  ;;  %s1643_s3 = sshll.u32 %s1773_s6, 4  ;;  %s1644_s3 = int_to_ptr.vmem [resolvable:$false] %s1643_s3 }
  0xe2   : > { %s2345_s0 = scalar_lea.hbm %s2464_s2, %s1334_s16  ;;  %p1642_p1 = pneg %p1641_p9 }
  0xe3   : > { %v531_v47 = vadd.f32 %v530_v42, %v525_v45  ;;  %v1314_v45 = vld [vmem:[%s2286_s23 + $0x10] sm:$0xff]  ;;  %p1646_p12 = scmp.lt.s32.totalorder %s2347_s15, %s1644_s3 }
  0xe5   : > { %v537_v37 = vadd.f32 %v536_v32, %v531_v47 }
  0xe6   : > { %v1477_v48 = vpop.eup %1476 }
  0xe7   : > { %862 = vrot.lane.b32.xlu1 %v1477_v48, %s1764_s11  ;;  %v543_v50 = vadd.f32 %v542_v46, %v537_v37  ;;  %1299 = vst.msk [vmem:[%s2286_s23 + $0x30] sm:$0xff] %vm487_vm0, %v1477_v48  ;;  %v1311_v46 = vld [vmem:[%s2286_s23 + $0x8] sm:$0xff]  ;;  %s1645_s11 = scalar_lea.vmem %s1644_s3, 2048 }
  0xe8   : > { %p1647_p13 = scmp.lt.s32.totalorder %s1645_s11, %s1639_s5 }
  0xe9   : > { %1480 = vtanh.f32 %v543_v50 }
  0xea   : > { %1482 = vrcp.f32 %v923_v22  ;;  %p1648_p7 = por %p1647_p13, %p1646_p12 }
  0xec   : > { %p1649_p0 = pnand %p1648_p7, %p1642_p1 }
  0xee   : > { %v1479_v52 = vpop.eup %1478 }
  0xef   : > { %915 = vrot.lane.b32.xlu0 %v1479_v52, %s1765_s29  ;;  %1309 = vst.msk [vmem:[%s2286_s23 + $0x38] sm:$0xff] %vm487_vm0, %v1479_v52  ;;  %v1320_v52 = vld [vmem:[%s2286_s23 + $0x20] sm:$0xff] }
  0xf6   : > { %v1481_v53 = vpop.eup %1480 }
  0xf7   : > { %v548_v51 = vmul.f32 %v1481_v53, %v2281_v44  ;;  %545 = vst.msk [vmem:[%s2286_s23] sm:$0xff] %vm487_vm0, %v1481_v53  ;;  %v1483_v33 = vpop.eup %1482 }
  0xf9   : > { %v549_v56 = vadd.f32 %v548_v51, %v546_v55 }
  0xfb   : > { %550 = vst.msk [vmem:[#allocation3] sm:$0xff] %vm487_vm0, %v549_v56 }
  0xfe   : > { %v929_v28 = vld [vmem:[%s2286_s23] sm:$0xff] }
 0x102   : > { %v593_v20 = vld [vmem:[#allocation3] sm:$0xff] }
 0x137   : > { %v598_v57 = vpop.permute.xlu0 %597 }
 0x138   : > { %v600_v58 = vmul.f32 %v1250_v54, %v598_v57  ;;  %v1323_v57 = vld [vmem:[%s2286_s23 + $0x28] sm:$0xff] }
 0x13a   : > { %v601_v59 = vadd.f32 %v600_v58, %v593_v20 }
 0x13b   : > { %v651_v60 = vpop.permute.xlu0 %650 }
 0x13c   : > { %603 = vst.msk [vmem:[#allocation3] sm:$0xff] %vm602_vm2, %v601_v59  ;;  %v653_v49 = vmul.f32 %v1260_v13, %v651_v60  ;;  %v1329_v60 = vld [vmem:[%s2286_s23 + $0x38] sm:$0xff] }
 0x141   : > { %v704_v0 = vpop.permute.xlu1 %703 }
 0x142   : > { %v706_v1 = vmul.f32 %v1270_v63, %v704_v0 }
 0x143   : > { %v646_v61 = vld [vmem:[#allocation3] sm:$0xff] }
 0x144   : > { %v654_v62 = vadd.f32 %v653_v49, %v646_v61 }
 0x146   : > { %656 = vst.msk [vmem:[#allocation3] sm:$0xff] %vm655_vm3, %v654_v62 }
 0x149   : > { %v757_v5 = vpop.permute.xlu1 %756 }
 0x14a   : > { %v759_v6 = vmul.f32 %v1280_v4, %v757_v5 }
 0x14d   : > { %v699_v2 = vld [vmem:[#allocation3] sm:$0xff] }
 0x14e   : > { %v707_v3 = vadd.f32 %v706_v1, %v699_v2 }
 0x150   : > { %709 = vst.msk [vmem:[#allocation3] sm:$0xff] %vm708_vm4, %v707_v3 }
 0x151   : > { %v810_v10 = vpop.permute.xlu0 %809 }
 0x152   : > { %v812_v11 = vmul.f32 %v1290_v9, %v810_v10 }
 0x157   : > { %v752_v7 = vld [vmem:[#allocation3] sm:$0xff] }
 0x158   : > { %v760_v8 = vadd.f32 %v759_v6, %v752_v7 }
 0x159   : > { %v863_v16 = vpop.permute.xlu1 %862 }
 0x15a   : > { %762 = vst.msk [vmem:[#allocation3] sm:$0xff] %vm761_vm5, %v760_v8  ;;  %v865_v17 = vmul.f32 %v1300_v15, %v863_v16 }
 0x161   : > { %v805_v12 = vld [vmem:[#allocation3] sm:$0xff]  ;;  %v916_v24 = vpop.permute.xlu0 %915 }
 0x162   : > { %v813_v14 = vadd.f32 %v812_v11, %v805_v12  ;;  %v918_v25 = vmul.f32 %v1310_v23, %v916_v24 }
 0x164   : > { %815 = vst.msk [vmem:[#allocation3] sm:$0xff] %vm814_vm6, %v813_v14 }
 0x16b   : > { %v858_v18 = vld [vmem:[#allocation3] sm:$0xff] }
 0x16c   : > { %v866_v21 = vadd.f32 %v865_v17, %v858_v18 }
 0x16e   : > { %868 = vst.msk [vmem:[#allocation3] sm:$0xff] %vm867_vm7, %v866_v21 }
 0x175   : > { %v911_v26 = vld [vmem:[#allocation3] sm:$0xff] }
 0x176   : > { %v919_v27 = vadd.f32 %v918_v25, %v911_v26 }
 0x178   : > { %921 = vst.msk [vmem:[#allocation3] sm:$0xff] %vm920_vm8, %v919_v27 }
 0x17f   : > { %v926_v34 = vld [vmem:[#allocation3] sm:$0xff] }
 0x180   : > { %v927_v35 = vsub.f32 %v925_v29, %v926_v34 }
 0x182   : > { %v928_v36 = vmul.f32 %v1483_v33, %v927_v35 }
 0x184   : > { %v945_v38 = vmul.f32 %v1260_v13, %v928_v36  ;;  %v936_v39 = vmul.f32 %v1250_v54, %v928_v36  ;;  %v931_v40 = vmul.f32 %v928_v36, %v2281_v44  ;;  %v963_v30 = vmul.f32 %v1280_v4, %v928_v36  ;;  %v1317_v44 = vld [vmem:[%s2286_s23 + $0x18] sm:$0xff]  ;;  %v1326_v54 = vld [vmem:[%s2286_s23 + $0x30] sm:$0xff] }
 0x185   : > { %v954_v42 = vmul.f32 %v1270_v63, %v928_v36  ;;  %v981_v43 = vmul.f32 %v1300_v15, %v928_v36  ;;  %v972_v31 = vmul.f32 %v1290_v9, %v928_v36  ;;  %v990_v32 = vmul.f32 %v1310_v23, %v928_v36 }
 0x186   : > { %947 = vrot.lane.b32.xlu0 %v945_v38, %s1766_s13  ;;  %938 = vrot.lane.b32.xlu1 %v936_v39, %s1767_s19  ;;  %v932_v41 = vadd.f32 %v931_v40, %v929_v28 }
 0x188   : > { %933 = vst.msk [vmem:[%s2286_s23] sm:$0xff] %vm487_vm0, %v932_v41 }
 0x18a   : > { %965 = vrot.lane.b32.xlu0 %v963_v30, %s1768_s12  ;;  %956 = vrot.lane.b32.xlu1 %v954_v42, %s1769_s7 }
 0x18e   : > { %983 = vrot.lane.b32.xlu0 %v981_v43, %s1770_s18  ;;  %974 = vrot.lane.b32.xlu1 %v972_v31, %s1771_s1 }
 0x192   : > { %992 = vrot.lane.b32.xlu1 %v990_v32, %s1772_s26 }
 0x1f8   : > { %v948_v47 = vpop.permute.xlu0 %947  ;;  %v939_v37 = vpop.permute.xlu1 %938 }
 0x1f9   : > { %v950_v48 = vadd.f32 %v1314_v45, %v948_v47  ;;  %v941_v50 = vadd.f32 %v1311_v46, %v939_v37 }
 0x1fb   : > { %1316 = vst.msk [vmem:[%s2286_s23 + $0x10] sm:$0xff] %vm487_vm0, %v950_v48  ;;  %1313 = vst.msk [vmem:[%s2286_s23 + $0x8] sm:$0xff] %vm487_vm0, %v941_v50 }
 0x1fc   : > { %v966_v53 = vpop.permute.xlu0 %965  ;;  %v957_v55 = vpop.permute.xlu1 %956 }
 0x1fd   : > { %v968_v51 = vadd.f32 %v1320_v52, %v966_v53  ;;  %v959_v56 = vadd.f32 %v1317_v44, %v957_v55 }
 0x1ff   : > { %1322 = vst.msk [vmem:[%s2286_s23 + $0x20] sm:$0xff] %vm487_vm0, %v968_v51  ;;  %1319 = vst.msk [vmem:[%s2286_s23 + $0x18] sm:$0xff] %vm487_vm0, %v959_v56 }
 0x200   : > { %v984_v20 = vpop.permute.xlu0 %983  ;;  %v975_v58 = vpop.permute.xlu1 %974 }
 0x201   : > { %v986_v59 = vadd.f32 %v1326_v54, %v984_v20  ;;  %v977_v13 = vadd.f32 %v1323_v57, %v975_v58 }
 0x203   : > { %1328 = vst.msk [vmem:[%s2286_s23 + $0x30] sm:$0xff] %vm487_vm0, %v986_v59  ;;  %1325 = vst.msk [vmem:[%s2286_s23 + $0x28] sm:$0xff] %vm487_vm0, %v977_v13 }
 0x204   : > { %v993_v49 = vpop.permute.xlu1 %992 }
 0x205   : > { %v995_v61 = vadd.f32 %v1329_v60, %v993_v49 }
 0x207   : > { %1331 = vst.msk [vmem:[%s2286_s23 + $0x38] sm:$0xff] %vm487_vm0, %v995_v61 }
 0x208   : > { %1652 = shalt.err (!%p1649_p0)
}
 0x209   : > { %s1653_s29 = scalar_lea.hbm %s2345_s0, 1024  ;;  %s1657_s19 = scalar_lea.hbm %s2464_s2, 4096 }
 0x20a   : > { %p1654_p4 = scmp.ne.s32.totalorder %s2345_s0, %s1653_s29  ;;  %p1658_p8 = scmp.lt.s32.totalorder %s2345_s0, %s2464_s2 }
 0x20b   : > { %p1659_p11 = scmp.lt.s32.totalorder %s1657_s19, %s1653_s29 }
 0x20c   : > { %p1655_p5 = pnand %p1654_p4, %p2465_p3 }
 0x20d   : > { %p1660_p6 = por %p1659_p11, %p1658_p8 }
 0x20e   : > { %p1656_p10 = pneg %p1655_p5 }
 0x210   : > { %p1661_p2 = pnand %p1660_p6, %p1656_p10 }
 0x212   : > { %1664 = shalt.err (!%p1661_p2)
}
 0x213   : > { %s1774_s18 = smov 128   ;;  %s1775_s17 = smov 256  }
 0x214   : > { %1351 = dma.vmem_to_hbm [thread:$0]  (%p2465_p3), %s2347_s15, 1024, %s2345_s0, %s998_s27, %s1774_s18, %s1775_s17, %s1762_s9  }
 0x215 PF: > { %p1380_p9 = scmp.ge.s32.totalorder %s1747_s28, 2  ;;  %s1027_s1 = sand.u32 1, %s1719_s21  }
 0x216   : > { %p2466_p1 = scmp.ne.s32.totalorder %s2447_s25, 0  ;;  %s1028_s26 = scalar_lea.sflag [#allocation6], %s1027_s1 }
 0x218   : > { %p1374_p12 = pnand %p1380_p9, %p2466_p1 }
 0x21a   : > { %p1375_p13 = pneg %p1374_p12 }
 0x21c   : > { %1714 = dma.done.wait (%p1375_p13), %s1028_s26, 1024  }
 0x21d   : > { %1716 = vsyncadd (%p1375_p13), %s1028_s26, 4294966272  ;;  %s29_s28 = sadd.s32 1, %s1747_s28   ;;  %s2467_s24 = sld [smem:[#allocation21_spill]] }
 0x21e   : > { %p26_p7 = scmp.ge.s32.totalorder %s29_s28, 6   ;;  %s2468_s23 = sld [smem:[#allocation28_spill]] }
 0x21f   : > { %s2469_s20 = sld [smem:[#allocation24_spill]]  ;;  %s2473_s21 = smov %s1723_s22 }
 0x220   : > { %s2470_s25 = sld [smem:[#allocation25_spill]] }
 0x221   : > { %s2471_s26 = sld [smem:[#allocation26_spill]]  ;;  %28 = sbr.rel (!%p26_p7) target bundleno = 20 (0x14), region = 163 }
 0x222   : > { %s2472_s27 = sld [smem:[#allocation27_spill]] }
 0x223   : > { %s2474_s22 = smov %s2467_s24 }
 0x225   : > { %s2475_s24 = smov %s2469_s20 }
 0x226   :  { %1033 = vsyncpa [#allocation5], 1 }
 0x227   :  { %1035 = vsyncpa [#allocation5 + $0x1], 1 }
 0x228   :  { %1036 = vsyncpa [#allocation10], 1 }
 0x229   :  { %1038 = vsyncpa [#allocation10 + $0x1], 1 }
 0x22a   :  { %1039 = vsyncpa [#allocation13], 1 }
 0x22b   :  { %1041 = vsyncpa [#allocation13 + $0x1], 1 }
 0x22c   :  { %1042 = vsyncpa [#allocation6], 1 }
 0x22d   :  { %1044 = vsyncpa [#allocation6 + $0x1], 1 }
 0x22e   :  { %1045 = vsyncpa [#allocation7], 1 }
 0x22f   :  { %1047 = vsyncpa [#allocation7 + $0x1], 1 }

</bundles_post_ra>
